<compile_context>
chip_gen: v7x
topology: tpu7x:2x2x1
jax: 0.10.0
libtpu: 0.0.40
codegen_flags: <defaults>
</compile_context>

<pallas_src>
import numpy as np
import jax
import jax.numpy as jnp
from jax.experimental import pallas as pl
from jax.experimental.pallas import tpu as pltpu


# ----------------------------- Pallas kernel -----------------------------

def _cnn_minatar_kernel(x_ref, wc_ref, bc_ref, w1_ref, b1_ref, w2_ref, b2_ref, o_ref):
    """Fused conv(as dense matmul)+ReLU -> fc_hidden+ReLU -> output for one batch tile.

    x:  (tileB, 100*Cin) f32    wc: (100*Cin, 1024) bf16   bc: (1, 1024) f32
    w1: (1024, 128)      bf16   b1: (1, 128)        f32
    w2: (128, n_pad)     bf16   b2: (1, n_pad)      f32
    o:  (tileB, n_pad)   f32 (or bf16)
    """
    # In-kernel cast (hidden under the DMA pipeline; avoids a separate wrapper HBM pass).
    x = x_ref[...].astype(jnp.bfloat16)
    # conv + ReLU: lane-dense (tileB, 1024) f32 slab, HWC flatten order.
    h = jnp.dot(x, wc_ref[...], preferred_element_type=jnp.float32)
    h = jnp.maximum(h + bc_ref[...], 0.0)
    # fc_hidden + ReLU
    z = jnp.dot(h.astype(jnp.bfloat16), w1_ref[...], preferred_element_type=jnp.float32)
    z = jnp.maximum(z + b1_ref[...], 0.0)
    # output layer (padded to lane-dense width; extra columns are zero-weight)
    o = jnp.dot(z.astype(jnp.bfloat16), w2_ref[...], preferred_element_type=jnp.float32)
    o_ref[...] = (o + b2_ref[...]).astype(o_ref.dtype)


# ----------------------------- wrapper -----------------------------

def _pick_tile_b(batch, cap=512):
    """Largest multiple-of-128 tile <= cap that still leaves >= 2 grid steps if possible.

    cap=512 amortizes the per-grid-step overhead and fills the MXU M dim while staying
    inside v5e's 16 MiB default scoped VMEM; >= 2 grid steps keeps both v7x TCs busy.
    """
    b_ceil = ((batch + 127) // 128) * 128
    tile_b = min(cap, b_ceil)
    while tile_b > 128 and pl.cdiv(batch, tile_b) < 2:
        tile_b -= 128
    return tile_b


def cnn_minatar_forward(x, kernel_params, tile_b=None, out_dtype=jnp.float32):
    """Forward pass identical in semantics to CNNMinAtar.forward (NHWC input)."""
    if x.ndim == 3:
        x = x[None]                       # torch: x.unsqueeze(0)
    B, H, W, Cin = x.shape
    assert (H, W) == (10, 10), "MinAtar torso assumes 10x10 observations"

    wc = kernel_params["wc_big"]          # (100*Cin, 1024) bf16
    bc = kernel_params["bc_big"]          # (1, 1024)       f32
    w1 = kernel_params["w1"]              # (1024, 128)     bf16
    b1 = kernel_params["b1"]              # (1, 128)        f32
    w2 = kernel_params["w2_pad"]          # (128, n_pad)    bf16
    b2 = kernel_params["b2_pad"]          # (1, n_pad)      f32
    n_out = kernel_params["n_out"]
    n_pad = w2.shape[1]
    K = 100 * Cin

    # Flatten the NHWC observation. No dtype cast and no batch pad in the wrapper:
    # reshape of a contiguous array is a metadata op, so there is NO extra HBM pass here.
    x_flat = x.reshape(B, K)

    if tile_b is None:
        tile_b = _pick_tile_b(B)
    grid = (pl.cdiv(B, tile_b),)          # ragged last block is masked by Pallas

    const = lambda i: (0, 0)              # weights: DMA'd once, VMEM-resident across grid
    out = pl.pallas_call(
        _cnn_minatar_kernel,
        out_shape=jax.ShapeDtypeStruct((B, n_pad), out_dtype),
        grid=grid,
        in_specs=[
            pl.BlockSpec((tile_b, K), lambda i: (i, 0)),   # per-tile input
            pl.BlockSpec((K, 1024), const),
            pl.BlockSpec((1, 1024), const),
            pl.BlockSpec((1024, 128), const),
            pl.BlockSpec((1, 128), const),
            pl.BlockSpec((128, n_pad), const),
            pl.BlockSpec((1, n_pad), const),
        ],
        out_specs=pl.BlockSpec((tile_b, n_pad), lambda i: (i, 0)),
        compiler_params=pltpu.CompilerParams(
            dimension_semantics=("parallel",)),   # batch tiles are independent (megacore)
    )(x_flat, wc, bc, w1, b1, w2, b2)

    return out[:, :n_out]


# ----------------------------- parameters -----------------------------

def _orthogonal(key, shape, gain=1.0):
    """Deterministic orthogonal init (same semantics as nn.init.orthogonal_)."""
    rows, cols = shape
    a = jax.random.normal(key, (max(rows, cols), min(rows, cols)), dtype=jnp.float32)
    q, r = jnp.linalg.qr(a)
    d = jnp.diag(r)
    q = q * jnp.where(d == 0, 1.0, jnp.sign(d))[None, :]   # fix QR sign ambiguity
    if rows < cols:
        q = q.T
    return gain * q[:rows, :cols]


def _conv_as_dense(wc_hwio):
    """Unrolled (Toeplitz) matrix of the 3x3 VALID conv on a 10x10 input.

    Row index    : (ih*10 + iw)*Cin + ci   (row-major flatten of the NHWC input)
    Column index : (oh*8 + ow)*16 + co     (HWC flatten of the conv activation)
    Mathematically identical to the conv (extra entries are exact zeros).
    """
    _, _, cin, cout = wc_hwio.shape  # (3, 3, Cin, 16)
    wb = np.zeros((10, 10, cin, 8, 8, cout), np.float32)
    for kh in range(3):
        for kw in range(3):
            for oh in range(8):
                for ow in range(8):
                    wb[oh + kh, ow + kw, :, oh, ow, :] = wc_hwio[kh, kw]
    return wb.reshape(10 * 10 * cin, 8 * 8 * cout)


def make_params(key, in_channels, n_outputs, weight_scale=float(np.sqrt(2))):
    k1, k2, k3 = jax.random.split(key, 3)
    # PyTorch-layout parameters (what the nn.Module would hold)
    wc_t = _orthogonal(k1, (16, in_channels * 9), gain=weight_scale).reshape(
        16, in_channels, 3, 3)                                     # (out, in, kh, kw)
    w1_t = _orthogonal(k2, (128, 16 * 8 * 8), gain=weight_scale)   # (128, 1024)
    w2_t = _orthogonal(k3, (n_outputs, 128), gain=weight_scale)    # (n_out, 128)
    bc_t = jnp.zeros((16,), jnp.float32)
    b1_t = jnp.zeros((128,), jnp.float32)
    b2_t = jnp.zeros((n_outputs,), jnp.float32)

    # ---- kernel-layout parameters ----
    wc_hwio = np.asarray(jnp.transpose(wc_t, (2, 3, 1, 0)))        # (3, 3, Cin, 16)
    wc_big = _conv_as_dense(wc_hwio)                               # (100*Cin, 1024)
    bc_big = jnp.tile(bc_t, 64).reshape(1, 64 * 16)                # bias per (pos, channel)
    # permute fc_hidden weight so the kernel's HWC flatten == torch's NCHW flatten
    w1 = jnp.transpose(w1_t.reshape(128, 16, 8, 8), (2, 3, 1, 0)).reshape(8 * 8 * 16, 128)
    n_pad = ((n_outputs + 127) // 128) * 128                       # lane-dense output width
    w2_pad = jnp.zeros((128, n_pad), jnp.float32).at[:, :n_outputs].set(w2_t.T)
    b2_pad = jnp.zeros((1, n_pad), jnp.float32).at[0, :n_outputs].set(b2_t)

    kernel_params = dict(
        wc_big=jnp.asarray(wc_big, jnp.bfloat16),
        bc_big=bc_big.astype(jnp.float32),
        w1=w1.astype(jnp.bfloat16),
        b1=b1_t.reshape(1, 128).astype(jnp.float32),
        w2_pad=w2_pad.astype(jnp.bfloat16),
        b2_pad=b2_pad,
        n_out=int(n_outputs),
    )
    torch_params = (wc_t, bc_t, w1_t, b1_t, w2_t, b2_t)
    return kernel_params, torch_params


# ----------------------------- pure-JAX reference -----------------------------

def reference_forward(x, torch_params):
    wc_t, bc, w1_t, b1, w2_t, b2 = torch_params
    if x.ndim == 3:
        x = x[None]
    conv = jax.lax.conv_general_dilated(
        x, jnp.transpose(wc_t, (2, 3, 1, 0)), window_strides=(1, 1),
        padding="VALID", dimension_numbers=("NHWC", "HWIO", "NHWC"))
    conv = jnp.maximum(conv + bc, 0.0)
    flat = jnp.transpose(conv, (0, 3, 1, 2)).reshape(x.shape[0], -1)  # torch NCHW flatten
    h = jnp.maximum(flat @ w1_t.T + b1, 0.0)
    return h @ w2_t.T + b2


# ----------------------------- main -----------------------------

if __name__ == "__main__":
    key = jax.random.PRNGKey(0)
    k_x, k_p = jax.random.split(key)

    B, Cin, n_outputs = 256, 4, 6
    x = jax.random.normal(k_x, (B, 10, 10, Cin), dtype=jnp.float32)  # NHWC

    kernel_params, torch_params = make_params(k_p, Cin, n_outputs)

    fwd = jax.jit(lambda v: cnn_minatar_forward(v, kernel_params))
    out = jax.block_until_ready(fwd(x))

    ref = reference_forward(x, torch_params)
    assert out.shape == (B, n_outputs)
    # bf16 matmul inputs (f32 accumulation) -> relaxed tolerance vs the f32 reference.
    np.testing.assert_allclose(np.asarray(out), np.asarray(ref), atol=1e-1, rtol=2e-2)

    print("KERNEL_OK")
</pallas_src>

<mosaic_0001>
module attributes {stable_mosaic.version = 11 : i64} {
  func.func @_cnn_minatar_kernel(%arg0: i32, %arg1: memref<128x400xf32, #tpu.memory_space<vmem>>, %arg2: memref<400x1024xbf16, #tpu.memory_space<vmem>>, %arg3: memref<1x1024xf32, #tpu.memory_space<vmem>>, %arg4: memref<1024x128xbf16, #tpu.memory_space<vmem>>, %arg5: memref<1x128xf32, #tpu.memory_space<vmem>>, %arg6: memref<128x128xbf16, #tpu.memory_space<vmem>>, %arg7: memref<1x128xf32, #tpu.memory_space<vmem>>, %arg8: memref<128x128xf32, #tpu.memory_space<vmem>>) attributes {dimension_semantics = [#tpu.dimension_semantics<parallel>], iteration_bounds = array<i64: 2>, scalar_prefetch = 0 : i64, scratch_operands = 0 : i64, tpu.core_type = #tpu.core_type<tc>, window_params = [{transform_indices = @transform_0, window_bounds = array<i64: 128, 400>}, {pipeline_mode = #tpu.pipeline_mode<synchronous>, transform_indices = @transform_1, window_bounds = array<i64: 400, 1024>}, {pipeline_mode = #tpu.pipeline_mode<synchronous>, transform_indices = @transform_2, window_bounds = array<i64: 1, 1024>}, {pipeline_mode = #tpu.pipeline_mode<synchronous>, transform_indices = @transform_3, window_bounds = array<i64: 1024, 128>}, {pipeline_mode = #tpu.pipeline_mode<synchronous>, transform_indices = @transform_4, window_bounds = array<i64: 1, 128>}, {pipeline_mode = #tpu.pipeline_mode<synchronous>, transform_indices = @transform_5, window_bounds = array<i64: 128, 128>}, {pipeline_mode = #tpu.pipeline_mode<synchronous>, transform_indices = @transform_6, window_bounds = array<i64: 1, 128>}, {transform_indices = @transform_7, window_bounds = array<i64: 128, 128>}]} {
    %c0 = arith.constant 0 : index
    %c0_0 = arith.constant 0 : index
    %0 = vector.load %arg1[%c0, %c0_0] : memref<128x400xf32, #tpu.memory_space<vmem>>, vector<128x400xf32>
    %1 = arith.truncf %0 : vector<128x400xf32> to vector<128x400xbf16>
    %c0_1 = arith.constant 0 : index
    %c0_2 = arith.constant 0 : index
    %2 = vector.load %arg2[%c0_1, %c0_2] : memref<400x1024xbf16, #tpu.memory_space<vmem>>, vector<400x1024xbf16>
    %cst = arith.constant dense<0.000000e+00> : vector<128x1024xf32>
    %3 = tpu.matmul %1, %2, %cst {dimension_numbers = #tpu.dot_dimension_numbers<[1], [0], [0], [1], [0, 0, 1, 1], [], []>} : vector<128x400xbf16>, vector<400x1024xbf16>, vector<128x1024xf32> -> vector<128x1024xf32>
    %c0_3 = arith.constant 0 : index
    %c0_4 = arith.constant 0 : index
    %4 = vector.load %arg3[%c0_3, %c0_4] : memref<1x1024xf32, #tpu.memory_space<vmem>>, vector<1x1024xf32>
    %5 = vector.broadcast %4 : vector<1x1024xf32> to vector<128x1024xf32>
    %6 = arith.addf %3, %5 : vector<128x1024xf32>
    %cst_5 = arith.constant 0.000000e+00 : f32
    %7 = vector.broadcast %cst_5 : f32 to vector<128x1024xf32>
    %8 = arith.maximumf %6, %7 : vector<128x1024xf32>
    %9 = arith.truncf %8 : vector<128x1024xf32> to vector<128x1024xbf16>
    %c0_6 = arith.constant 0 : index
    %c0_7 = arith.constant 0 : index
    %10 = vector.load %arg4[%c0_6, %c0_7] : memref<1024x128xbf16, #tpu.memory_space<vmem>>, vector<1024x128xbf16>
    %cst_8 = arith.constant dense<0.000000e+00> : vector<128x128xf32>
    %11 = tpu.matmul %9, %10, %cst_8 {dimension_numbers = #tpu.dot_dimension_numbers<[1], [0], [0], [1], [0, 0, 1, 1], [], []>} : vector<128x1024xbf16>, vector<1024x128xbf16>, vector<128x128xf32> -> vector<128x128xf32>
    %c0_9 = arith.constant 0 : index
    %c0_10 = arith.constant 0 : index
    %12 = vector.load %arg5[%c0_9, %c0_10] : memref<1x128xf32, #tpu.memory_space<vmem>>, vector<1x128xf32>
    %13 = vector.broadcast %12 : vector<1x128xf32> to vector<128x128xf32>
    %14 = arith.addf %11, %13 : vector<128x128xf32>
    %cst_11 = arith.constant 0.000000e+00 : f32
    %15 = vector.broadcast %cst_11 : f32 to vector<128x128xf32>
    %16 = arith.maximumf %14, %15 : vector<128x128xf32>
    %17 = arith.truncf %16 : vector<128x128xf32> to vector<128x128xbf16>
    %c0_12 = arith.constant 0 : index
    %c0_13 = arith.constant 0 : index
    %18 = vector.load %arg6[%c0_12, %c0_13] : memref<128x128xbf16, #tpu.memory_space<vmem>>, vector<128x128xbf16>
    %cst_14 = arith.constant dense<0.000000e+00> : vector<128x128xf32>
    %19 = tpu.matmul %17, %18, %cst_14 {dimension_numbers = #tpu.dot_dimension_numbers<[1], [0], [0], [1], [0, 0, 1, 1], [], []>} : vector<128x128xbf16>, vector<128x128xbf16>, vector<128x128xf32> -> vector<128x128xf32>
    %c0_15 = arith.constant 0 : index
    %c0_16 = arith.constant 0 : index
    %20 = vector.load %arg7[%c0_15, %c0_16] : memref<1x128xf32, #tpu.memory_space<vmem>>, vector<1x128xf32>
    %21 = vector.broadcast %20 : vector<1x128xf32> to vector<128x128xf32>
    %22 = arith.addf %19, %21 : vector<128x128xf32>
    %c0_17 = arith.constant 0 : index
    %c0_18 = arith.constant 0 : index
    %23 = vector.load %arg8[%c0_17, %c0_18] : memref<128x128xf32, #tpu.memory_space<vmem>>, vector<128x128xf32>
    tpu.vector_store %arg8[%c0_17, %c0_18], %22 {strides = array<i32>} : memref<128x128xf32, #tpu.memory_space<vmem>>, vector<128x128xf32>,
    return
  }
  func.func @transform_0(%arg0: i32) -> (i32, i32) {
    %c0_i32 = arith.constant 0 : i32
    %c0_i32_0 = arith.constant 0 : i32
    return %arg0, %c0_i32 : i32, i32
  }
  func.func @transform_1(%arg0: i32) -> (i32, i32) {
    %c0_i32 = arith.constant 0 : i32
    %c0_i32_0 = arith.constant 0 : i32
    %c0_i32_1 = arith.constant 0 : i32
    return %c0_i32, %c0_i32_0 : i32, i32
  }
  func.func @transform_2(%arg0: i32) -> (i32, i32) {
    %c0_i32 = arith.constant 0 : i32
    %c0_i32_0 = arith.constant 0 : i32
    %c0_i32_1 = arith.constant 0 : i32
    return %c0_i32, %c0_i32_0 : i32, i32
  }
  func.func @transform_3(%arg0: i32) -> (i32, i32) {
    %c0_i32 = arith.constant 0 : i32
    %c0_i32_0 = arith.constant 0 : i32
    %c0_i32_1 = arith.constant 0 : i32
    return %c0_i32, %c0_i32_0 : i32, i32
  }
  func.func @transform_4(%arg0: i32) -> (i32, i32) {
    %c0_i32 = arith.constant 0 : i32
    %c0_i32_0 = arith.constant 0 : i32
    %c0_i32_1 = arith.constant 0 : i32
    return %c0_i32, %c0_i32_0 : i32, i32
  }
  func.func @transform_5(%arg0: i32) -> (i32, i32) {
    %c0_i32 = arith.constant 0 : i32
    %c0_i32_0 = arith.constant 0 : i32
    %c0_i32_1 = arith.constant 0 : i32
    return %c0_i32, %c0_i32_0 : i32, i32
  }
  func.func @transform_6(%arg0: i32) -> (i32, i32) {
    %c0_i32 = arith.constant 0 : i32
    %c0_i32_0 = arith.constant 0 : i32
    %c0_i32_1 = arith.constant 0 : i32
    return %c0_i32, %c0_i32_0 : i32, i32
  }
  func.func @transform_7(%arg0: i32) -> (i32, i32) {
    %c0_i32 = arith.constant 0 : i32
    %c0_i32_0 = arith.constant 0 : i32
    return %arg0, %c0_i32 : i32, i32
  }
}

</mosaic_0001>

<bundles_post_ra>
// kernel: _lambda_.1
= control target key start
LH: loop header
LB: loop body
LE: loop exit
PB: predicated region body
PF: predicated region fallthrough
CT: control target
= control target key end

     0   :  { %s4939_s24 = smov 0   ;;  %s6339_s0 = inlined_call_operand.vmem [shape: f32[256,400], index: 0, kind: input, shape index: {}]   ;;  %s6340_s1 = inlined_call_operand.vmem [shape: bf16[400,1024], index: 1, kind: input, shape index: {}]   ;;  %s6341_s2 = inlined_call_operand.vmem [shape: f32[1,1024], index: 2, kind: input, shape index: {}]   ;;  %s6342_s3 = inlined_call_operand.vmem [shape: bf16[1024,128], index: 3, kind: input, shape index: {}]   ;;  %s6343_s4 = inlined_call_operand.vmem [shape: f32[1,128], index: 4, kind: input, shape index: {}, may-alias: {4,6}]   ;;  %s6344_s5 = inlined_call_operand.vmem [shape: bf16[128,128], index: 5, kind: input, shape index: {}]   ;;  %s6345_s6 = inlined_call_operand.vmem [shape: f32[1,128], index: 6, kind: input, shape index: {}, may-alias: {4,6}]   ;;  %s6346_s7 = inlined_call_operand.vmem [shape: f32[256,128], index: 7, kind: output, shape index: {}]  }
   0x1 LB: > { %s3916_s25 = sadd.s32 4294967295, %s4897_s24   ;;  %p3920_p0 = scmp.ge.s32.totalorder %s4897_s24, 1  ;;  %s4897_s24 = sphi %s4939_s24, %s17_s24  }
   0x2   : > { %p239_p1 = scmp.lt.s32.totalorder %s4897_s24, 3 }
   0x4   : > { %p240_p2 = pnand %p3920_p0, %p239_p1 }
   0x5   : > { %v382_v0 = vld [vmem:[%s6340_s1] sm:$0xff] (!%p240_p2)  ;;  %v383_v2 = vld [vmem:[%s6340_s1 + $0x8] sm:$0xff] (!%p240_p2)  ;;  %s3921_s29 = sshll.u32 (!%p240_p2), %s3916_s25, 4  ;;  %vm1624_vm0 = vcmask (!%p240_p2), 130048  }
   0x6   : > { %243 = sbr.rel (%p240_p2) target bundleno = 986 (0x3da), region = 48  ;;  %v386_v1 = vld [vmem:[%s6340_s1 + $0x20] sm:$0xff] (!%p240_p2)  ;;  %v387_v4 = vld [vmem:[%s6340_s1 + $0x28] sm:$0xff] (!%p240_p2)  ;;  %p273_p3 = scmp.lt.s32.totalorder (!%p240_p2), %s3921_s29, 31 }
   0x7   : > { %v3927_v3 = vcombine.high (!%p240_p2), %v382_v0, %v386_v1  ;;  %v3926_v5 = vcombine.low (!%p240_p2), %v382_v0, %v386_v1  ;;  %v390_v6 = vld [vmem:[%s6340_s1 + $0x40] sm:$0xff] (!%p240_p2)  ;;  %v3929_v8 = vcombine.high (!%p240_p2), %v383_v2, %v387_v4  ;;  %v3928_v9 = vcombine.low (!%p240_p2), %v383_v2, %v387_v4  ;;  %v391_v11 = vld [vmem:[%s6340_s1 + $0x48] sm:$0xff] (!%p240_p2) }
   0x8   : > { %v394_v7 = vld [vmem:[%s6340_s1 + $0x60] sm:$0xff] (!%p240_p2)  ;;  %v395_v12 = vld [vmem:[%s6340_s1 + $0x68] sm:$0xff] (!%p240_p2) }
   0x9   : > { %v3935_v10 = vcombine.high (!%p240_p2), %v390_v6, %v394_v7  ;;  %v398_v13 = vld [vmem:[%s6340_s1 + $0x80] sm:$0xff] (!%p240_p2)  ;;  %1649 = vmatprep.subr.bf16.mxu0 (!%p240_p2), %v3927_v3  ;;  %v3937_v14 = vcombine.high (!%p240_p2), %v391_v11, %v395_v12  ;;  %v399_v16 = vld [vmem:[%s6340_s1 + $0x88] sm:$0xff] (!%p240_p2)  ;;  %1875 = vmatprep.subr.bf16.mxu1 (!%p240_p2), %v3929_v8  ;;  %v3934_v18 = vcombine.low (!%p240_p2), %v390_v6, %v394_v7 }
   0xa   : > { %v402_v15 = vld [vmem:[%s6340_s1 + $0xa0] sm:$0xff] (!%p240_p2)  ;;  %v403_v17 = vld [vmem:[%s6340_s1 + $0xa8] sm:$0xff] (!%p240_p2)  ;;  %1650 = vmatpush1.bf16.msra.mxu0 (!%p240_p2), %v3926_v5  ;;  %1876 = vmatpush1.bf16.msra.mxu1 (!%p240_p2), %v3928_v9  ;;  %v3936_v19 = vcombine.low (!%p240_p2), %v391_v11, %v395_v12 }
   0xb   : > { %1651 = vmatprep.subr.bf16.mxu0 (!%p240_p2), %v3935_v10  ;;  %v3943_v20 = vcombine.high (!%p240_p2), %v398_v13, %v402_v15  ;;  %1877 = vmatprep.subr.bf16.mxu1 (!%p240_p2), %v3937_v14  ;;  %v3945_v21 = vcombine.high (!%p240_p2), %v399_v16, %v403_v17  ;;  %v406_v22 = vld [vmem:[%s6340_s1 + $0xc0] sm:$0xff] (!%p240_p2)  ;;  %v407_v24 = vld [vmem:[%s6340_s1 + $0xc8] sm:$0xff] (!%p240_p2)  ;;  %v3942_v26 = vcombine.low (!%p240_p2), %v398_v13, %v402_v15 }
   0xc   : > { %v410_v23 = vld [vmem:[%s6340_s1 + $0xe0] sm:$0xff] (!%p240_p2)  ;;  %v411_v25 = vld [vmem:[%s6340_s1 + $0xe8] sm:$0xff] (!%p240_p2)  ;;  %v3944_v27 = vcombine.low (!%p240_p2), %v399_v16, %v403_v17 }
   0xd   : > { %v3951_v28 = vcombine.high %v406_v22, %v410_v23  ;;  %v3953_v29 = vcombine.high %v407_v24, %v411_v25  ;;  %v414_v30 = vld [vmem:[%s6340_s1 + $0x100] sm:$0xff]  ;;  %v415_v32 = vld [vmem:[%s6340_s1 + $0x108] sm:$0xff]  ;;  %s6348_s29 = smov (!%p273_p3, %s3921_s29), 31  ;;  %v3950_v34 = vcombine.low %v406_v22, %v410_v23  ;;  %v3952_v35 = vcombine.low %v407_v24, %v411_v25 }
   0xe   : > { %1652 = vmatpush1.bf16.msra.mxu0 %v3934_v18  ;;  %1878 = vmatpush1.bf16.msra.mxu1 %v3936_v19  ;;  %v418_v31 = vld [vmem:[%s6340_s1 + $0x120] sm:$0xff]  ;;  %v419_v33 = vld [vmem:[%s6340_s1 + $0x128] sm:$0xff]  ;;  %s4234_s10 = sshll.u32 %s6348_s29, 5  ;;  %s3925_s22 = sshll.u32 %s6348_s29, 3 }
   0xf   : > { %1653 = vmatprep.subr.bf16.mxu0 %v3943_v20  ;;  %1879 = vmatprep.subr.bf16.mxu1 %v3945_v21  ;;  %v3959_v36 = vcombine.high %v414_v30, %v418_v31  ;;  %v3961_v37 = vcombine.high %v415_v32, %v419_v33  ;;  %v422_v38 = vld [vmem:[%s6340_s1 + $0x140] sm:$0xff]  ;;  %v423_v40 = vld [vmem:[%s6340_s1 + $0x148] sm:$0xff]  ;;  %v3958_v42 = vcombine.low %v414_v30, %v418_v31  ;;  %s5031_s16 = scalar_lea.vmem %s6339_s0, %s4234_s10  ;;  %s6318_s30 = scalar_lea.vmem %s6346_s7, %s3925_s22 }
  0x10   : > { %v426_v39 = vld [vmem:[%s6340_s1 + $0x160] sm:$0xff]  ;;  %v427_v41 = vld [vmem:[%s6340_s1 + $0x168] sm:$0xff]  ;;  %v3960_v43 = vcombine.low %v415_v32, %v419_v33 }
  0x11   : > { %v3967_v44 = vcombine.high %v422_v38, %v426_v39  ;;  %v3969_v45 = vcombine.high %v423_v40, %v427_v41  ;;  %v430_v46 = vld [vmem:[%s6340_s1 + $0x180] sm:$0xff]  ;;  %v431_v48 = vld [vmem:[%s6340_s1 + $0x188] sm:$0xff]  ;;  %v3966_v50 = vcombine.low %v422_v38, %v426_v39  ;;  %v3968_v51 = vcombine.low %v423_v40, %v427_v41 }
  0x12   : > { %1654 = vmatpush1.bf16.msra.mxu0 %v3942_v26  ;;  %1880 = vmatpush1.bf16.msra.mxu1 %v3944_v27  ;;  %v434_v47 = vld [vmem:[%s6340_s1 + $0x1a0] sm:$0xff]  ;;  %v435_v49 = vld [vmem:[%s6340_s1 + $0x1a8] sm:$0xff] }
  0x13   : > { %1655 = vmatprep.subr.bf16.mxu0 %v3951_v28  ;;  %1881 = vmatprep.subr.bf16.mxu1 %v3953_v29  ;;  %v3975_v52 = vcombine.high %v430_v46, %v434_v47  ;;  %v287_v53 = vld [vmem:[%s5031_s16 + $0x8] sm:$0xff]  ;;  %v3977_v55 = vcombine.high %v431_v48, %v435_v49  ;;  %v438_v56 = vld [vmem:[%s6340_s1 + $0x1c0] sm:$0xff]  ;;  %v3974_v61 = vcombine.low %v430_v46, %v434_v47 }
  0x14   : > { %v291_v54 = vld [vmem:[%s5031_s16 + $0x28] sm:$0xff]  ;;  %v442_v57 = vld [vmem:[%s6340_s1 + $0x1e0] sm:$0xff]  ;;  %v3976_v62 = vcombine.low %v431_v48, %v435_v49 }
  0x15   : > { %v5047_v58 = vpack.c.bf16 %v291_v54, %v287_v53  ;;  %v439_v59 = vld [vmem:[%s6340_s1 + $0x1c8] sm:$0xff]  ;;  %v3983_v63 = vcombine.high %v438_v56, %v442_v57  ;;  %v446_v1 = vld [vmem:[%s6340_s1 + $0x200] sm:$0xff]  ;;  %v3982_v5 = vcombine.low %v438_v56, %v442_v57 }
  0x16   : > { %1656 = vmatpush1.bf16.msra.mxu0 %v3950_v34  ;;  %1882 = vmatpush1.bf16.msra.mxu1 %v3952_v35  ;;  %v443_v60 = vld [vmem:[%s6340_s1 + $0x1e8] sm:$0xff]  ;;  %v450_v2 = vld [vmem:[%s6340_s1 + $0x220] sm:$0xff] }
  0x17   : > { %1657 = vmatprep.subr.bf16.mxu0 %v3959_v36  ;;  %1883 = vmatprep.subr.bf16.mxu1 %v3961_v37  ;;  %v3985_v0 = vcombine.high %v439_v59, %v443_v60  ;;  %v447_v3 = vld [vmem:[%s6340_s1 + $0x208] sm:$0xff]  ;;  %v3984_v6 = vcombine.low %v439_v59, %v443_v60  ;;  %v3991_v7 = vcombine.high %v446_v1, %v450_v2  ;;  %v454_v9 = vld [vmem:[%s6340_s1 + $0x240] sm:$0xff] }
  0x18   : > { %1681 = vmatprep.mubr.bf16.mxu0 %v5047_v58  ;;  %1907 = vmatprep.mubr.bf16.mxu1 %v5047_v58  ;;  %v451_v4 = vld [vmem:[%s6340_s1 + $0x228] sm:$0xff]  ;;  %v458_v10 = vld [vmem:[%s6340_s1 + $0x260] sm:$0xff]  ;;  %v3990_v13 = vcombine.low %v446_v1, %v450_v2 }
  0x19   : > { %v3993_v8 = vcombine.high %v447_v3, %v451_v4  ;;  %v455_v11 = vld [vmem:[%s6340_s1 + $0x248] sm:$0xff]  ;;  %v3992_v14 = vcombine.low %v447_v3, %v451_v4  ;;  %v3999_v15 = vcombine.high %v454_v9, %v458_v10  ;;  %v462_v17 = vld [vmem:[%s6340_s1 + $0x280] sm:$0xff]  ;;  %v3998_v21 = vcombine.low %v454_v9, %v458_v10 }
  0x1a   : > { %1658 = vmatpush1.bf16.msra.mxu0 %v3958_v42  ;;  %1884 = vmatpush1.bf16.msra.mxu1 %v3960_v43  ;;  %v459_v12 = vld [vmem:[%s6340_s1 + $0x268] sm:$0xff]  ;;  %v466_v18 = vld [vmem:[%s6340_s1 + $0x2a0] sm:$0xff] }
  0x1b   : > { %1659 = vmatprep.subr.bf16.mxu0 %v3967_v44  ;;  %1885 = vmatprep.subr.bf16.mxu1 %v3969_v45  ;;  %v4001_v16 = vcombine.high %v455_v11, %v459_v12  ;;  %v463_v19 = vld [vmem:[%s6340_s1 + $0x288] sm:$0xff]  ;;  %v4000_v22 = vcombine.low %v455_v11, %v459_v12  ;;  %v4007_v23 = vcombine.high %v462_v17, %v466_v18  ;;  %v470_v25 = vld [vmem:[%s6340_s1 + $0x2c0] sm:$0xff] }
  0x1c   : > { %v467_v20 = vld [vmem:[%s6340_s1 + $0x2a8] sm:$0xff]  ;;  %v474_v26 = vld [vmem:[%s6340_s1 + $0x2e0] sm:$0xff]  ;;  %v4006_v29 = vcombine.low %v462_v17, %v466_v18 }
  0x1d   : > { %v4009_v24 = vcombine.high %v463_v19, %v467_v20  ;;  %v471_v27 = vld [vmem:[%s6340_s1 + $0x2c8] sm:$0xff]  ;;  %v4008_v30 = vcombine.low %v463_v19, %v467_v20  ;;  %v4015_v31 = vcombine.high %v470_v25, %v474_v26  ;;  %v478_v33 = vld [vmem:[%s6340_s1 + $0x300] sm:$0xff]  ;;  %v4014_v37 = vcombine.low %v470_v25, %v474_v26 }
  0x1e   : > { %1660 = vmatpush1.bf16.msra.mxu0 %v3966_v50  ;;  %1886 = vmatpush1.bf16.msra.mxu1 %v3968_v51  ;;  %v475_v28 = vld [vmem:[%s6340_s1 + $0x2e8] sm:$0xff]  ;;  %v482_v34 = vld [vmem:[%s6340_s1 + $0x320] sm:$0xff] }
  0x1f   : > { %1661 = vmatprep.subr.bf16.mxu0 %v3975_v52  ;;  %1887 = vmatprep.subr.bf16.mxu1 %v3977_v55  ;;  %v4017_v32 = vcombine.high %v471_v27, %v475_v28  ;;  %v479_v35 = vld [vmem:[%s6340_s1 + $0x308] sm:$0xff]  ;;  %v4016_v38 = vcombine.low %v471_v27, %v475_v28  ;;  %v4023_v39 = vcombine.high %v478_v33, %v482_v34  ;;  %v486_v41 = vld [vmem:[%s6340_s1 + $0x340] sm:$0xff] }
  0x20   : > { %v483_v36 = vld [vmem:[%s6340_s1 + $0x328] sm:$0xff]  ;;  %v490_v42 = vld [vmem:[%s6340_s1 + $0x360] sm:$0xff]  ;;  %v4022_v45 = vcombine.low %v478_v33, %v482_v34 }
  0x21   : > { %v4025_v40 = vcombine.high %v479_v35, %v483_v36  ;;  %v487_v43 = vld [vmem:[%s6340_s1 + $0x348] sm:$0xff]  ;;  %v4024_v46 = vcombine.low %v479_v35, %v483_v36  ;;  %v4031_v47 = vcombine.high %v486_v41, %v490_v42  ;;  %v494_v49 = vld [vmem:[%s6340_s1 + $0x380] sm:$0xff]  ;;  %v4030_v53 = vcombine.low %v486_v41, %v490_v42 }
  0x22   : > { %1662 = vmatpush1.bf16.msra.mxu0 %v3974_v61  ;;  %1888 = vmatpush1.bf16.msra.mxu1 %v3976_v62  ;;  %v491_v44 = vld [vmem:[%s6340_s1 + $0x368] sm:$0xff]  ;;  %v498_v50 = vld [vmem:[%s6340_s1 + $0x3a0] sm:$0xff] }
  0x23   : > { %1663 = vmatprep.subr.bf16.mxu0 %v3983_v63  ;;  %1889 = vmatprep.subr.bf16.mxu1 %v3985_v0  ;;  %v4033_v48 = vcombine.high %v487_v43, %v491_v44  ;;  %v495_v51 = vld [vmem:[%s6340_s1 + $0x388] sm:$0xff]  ;;  %v4032_v54 = vcombine.low %v487_v43, %v491_v44  ;;  %v4039_v55 = vcombine.high %v494_v49, %v498_v50  ;;  %v502_v57 = vld [vmem:[%s6340_s1 + $0x3c0] sm:$0xff] }
  0x24   : > { %v499_v52 = vld [vmem:[%s6340_s1 + $0x3a8] sm:$0xff]  ;;  %v506_v59 = vld [vmem:[%s6340_s1 + $0x3e0] sm:$0xff]  ;;  %v4038_v62 = vcombine.low %v494_v49, %v498_v50 }
  0x25   : > { %v4041_v56 = vcombine.high %v495_v51, %v499_v52  ;;  %v503_v60 = vld [vmem:[%s6340_s1 + $0x3c8] sm:$0xff]  ;;  %v4040_v63 = vcombine.low %v495_v51, %v499_v52  ;;  %v4047_v0 = vcombine.high %v502_v57, %v506_v59  ;;  %v510_v2 = vld [vmem:[%s6340_s1 + $0x400] sm:$0xff] }
  0x26   : > { %1664 = vmatpush1.bf16.msra.mxu0 %v3982_v5  ;;  %1890 = vmatpush1.bf16.msra.mxu1 %v3984_v6  ;;  %v507_v61 = vld [vmem:[%s6340_s1 + $0x3e8] sm:$0xff]  ;;  %v514_v3 = vld [vmem:[%s6340_s1 + $0x420] sm:$0xff]  ;;  %v4046_v6 = vcombine.low %v502_v57, %v506_v59 }
  0x27   : > { %1665 = vmatprep.subr.bf16.mxu0 %v3991_v7  ;;  %1891 = vmatprep.subr.bf16.mxu1 %v3993_v8  ;;  %v4049_v1 = vcombine.high %v503_v60, %v507_v61  ;;  %v511_v4 = vld [vmem:[%s6340_s1 + $0x408] sm:$0xff]  ;;  %v286_v7 = vld [vmem:[%s5031_s16] sm:$0xff]  ;;  %v4048_v9 = vcombine.low %v503_v60, %v507_v61  ;;  %v4055_v10 = vcombine.high %v510_v2, %v514_v3 }
  0x28   : > { %v515_v5 = vld [vmem:[%s6340_s1 + $0x428] sm:$0xff]  ;;  %v290_v8 = vld [vmem:[%s5031_s16 + $0x20] sm:$0xff]  ;;  %v4054_v17 = vcombine.low %v510_v2, %v514_v3 }
  0x29   : > { %v4057_v11 = vcombine.high %v511_v4, %v515_v5  ;;  %v295_v12 = vld [vmem:[%s5031_s16 + $0x48] sm:$0xff]  ;;  %v4056_v20 = vcombine.low %v511_v4, %v515_v5  ;;  %v294_v28 = vld [vmem:[%s5031_s16 + $0x40] sm:$0xff] }
  0x2a   : > { %1666 = vmatpush1.bf16.msra.mxu0 %v3990_v13  ;;  %1892 = vmatpush1.bf16.msra.mxu1 %v3992_v14  ;;  %v299_v13 = vld [vmem:[%s5031_s16 + $0x68] sm:$0xff]  ;;  %v5169_v14 = vpack.c.bf16 %v290_v8, %v286_v7  ;;  %v306_v49 = vld [vmem:[%s5031_s16 + $0xa0] sm:$0xff] }
  0x2b   : > { %1667 = vmatprep.subr.bf16.mxu0 %v3999_v15  ;;  %1893 = vmatprep.subr.bf16.mxu1 %v4001_v16  ;;  %v518_v15 = vld [vmem:[%s6340_s1 + $0x440] sm:$0xff]  ;;  %v519_v18 = vld [vmem:[%s6340_s1 + $0x448] sm:$0xff] }
  0x2c   : > { %v522_v16 = vld [vmem:[%s6340_s1 + $0x460] sm:$0xff]  ;;  %v523_v19 = vld [vmem:[%s6340_s1 + $0x468] sm:$0xff] }
  0x2d   : > { %v4065_v25 = vcombine.high %v519_v18, %v523_v19  ;;  %v527_v26 = vld [vmem:[%s6340_s1 + $0x488] sm:$0xff]  ;;  %v550_v57 = vld [vmem:[%s6340_s1 + $0x540] sm:$0xff] }
  0x2e   : > { %1668 = vmatpush1.bf16.msra.mxu0 %v3998_v21  ;;  %1894 = vmatpush1.bf16.msra.mxu1 %v4000_v22  ;;  %v5183_v21 = vpack.c.bf16 %v299_v13, %v295_v12  ;;  %v4063_v22 = vcombine.high %v518_v15, %v522_v16  ;;  %v531_v27 = vld [vmem:[%s6340_s1 + $0x4a8] sm:$0xff]  ;;  %v554_v59 = vld [vmem:[%s6340_s1 + $0x560] sm:$0xff] }
  0x2f   : > { %1669 = vmatprep.subr.bf16.mxu0 %v4007_v23  ;;  %1895 = vmatprep.subr.bf16.mxu1 %v4009_v24  ;;  %v526_v23 = vld [vmem:[%s6340_s1 + $0x480] sm:$0xff]  ;;  %v307_v33 = vld [vmem:[%s5031_s16 + $0xa8] sm:$0xff]  ;;  %v4073_v35 = vcombine.high %v527_v26, %v531_v27  ;;  %v4072_v43 = vcombine.low %v527_v26, %v531_v27  ;;  %v4095_v7 = vcombine.high %v550_v57, %v554_v59 }
  0x30   : > { %v530_v24 = vld [vmem:[%s6340_s1 + $0x4a0] sm:$0xff]  ;;  %v539_v41 = vld [vmem:[%s6340_s1 + $0x4e8] sm:$0xff]  ;;  %v4094_v13 = vcombine.low %v550_v57, %v554_v59 }
  0x31   : > { %v4071_v34 = vcombine.high %v526_v23, %v530_v24  ;;  %v4070_v42 = vcombine.low %v526_v23, %v530_v24  ;;  %v543_v50 = vld [vmem:[%s6340_s1 + $0x508] sm:$0xff]  ;;  %v558_v2 = vld [vmem:[%s6340_s1 + $0x580] sm:$0xff] }
  0x32   : > { %1670 = vmatpush1.bf16.msra.mxu0 %v4006_v29  ;;  %1896 = vmatpush1.bf16.msra.mxu1 %v4008_v30  ;;  %v298_v29 = vld [vmem:[%s5031_s16 + $0x60] sm:$0xff]  ;;  %v4062_v30 = vcombine.low %v518_v15, %v522_v16  ;;  %v547_v51 = vld [vmem:[%s6340_s1 + $0x528] sm:$0xff] }
  0x33   : > { %1671 = vmatprep.subr.bf16.mxu0 %v4015_v31  ;;  %1897 = vmatprep.subr.bf16.mxu1 %v4017_v32  ;;  %v4064_v31 = vcombine.low %v519_v18, %v523_v19  ;;  %v303_v32 = vld [vmem:[%s5031_s16 + $0x88] sm:$0xff]  ;;  %v5205_v36 = vpack.c.bf16 %v298_v29, %v294_v28  ;;  %v562_v3 = vld [vmem:[%s6340_s1 + $0x5a0] sm:$0xff] }
  0x34   : > { %v551_v60 = vld [vmem:[%s6340_s1 + $0x548] sm:$0xff]  ;;  %v310_v4 = vld [vmem:[%s5031_s16 + $0xc0] sm:$0xff]  ;;  %v4103_v18 = vcombine.high %v558_v2, %v562_v3 }
  0x35   : > { %v314_v5 = vld [vmem:[%s5031_s16 + $0xe0] sm:$0xff]  ;;  %v319_v8 = vld [vmem:[%s5031_s16 + $0x108] sm:$0xff] }
  0x36   : > { %1672 = vmatpush1.bf16.msra.mxu0 %v4014_v37  ;;  %1898 = vmatpush1.bf16.msra.mxu1 %v4016_v38  ;;  %v534_v37 = vld [vmem:[%s6340_s1 + $0x4c0] sm:$0xff]  ;;  %v563_v12 = vld [vmem:[%s6340_s1 + $0x5a8] sm:$0xff] }
  0x37   : > { %1673 = vmatprep.subr.bf16.mxu0 %v4023_v39  ;;  %1899 = vmatprep.subr.bf16.mxu1 %v4025_v40  ;;  %v538_v38 = vld [vmem:[%s6340_s1 + $0x4e0] sm:$0xff]  ;;  %v5213_v39 = vpack.c.bf16 %v307_v33, %v303_v32  ;;  %v535_v40 = vld [vmem:[%s6340_s1 + $0x4c8] sm:$0xff] }
  0x38   : > { %v4079_v44 = vcombine.high %v534_v37, %v538_v38  ;;  %v4078_v52 = vcombine.low %v534_v37, %v538_v38  ;;  %v566_v15 = vld [vmem:[%s6340_s1 + $0x5c0] sm:$0xff]  ;;  %v567_v19 = vld [vmem:[%s6340_s1 + $0x5c8] sm:$0xff] }
  0x39   : > { %v570_v16 = vld [vmem:[%s6340_s1 + $0x5e0] sm:$0xff]  ;;  %v327_v33 = vld [vmem:[%s5031_s16 + $0x148] sm:$0xff] }
  0x3a   : > { %1674 = vmatpush1.bf16.msra.mxu0 %v4022_v45  ;;  %1900 = vmatpush1.bf16.msra.mxu1 %v4024_v46  ;;  %v302_v45 = vld [vmem:[%s5031_s16 + $0x80] sm:$0xff]  ;;  %v4081_v46 = vcombine.high %v535_v40, %v539_v41  ;;  %v331_v37 = vld [vmem:[%s5031_s16 + $0x168] sm:$0xff]  ;;  %v4110_v38 = vcombine.low %v566_v15, %v570_v16 }
  0x3b   : > { %1675 = vmatprep.subr.bf16.mxu0 %v4031_v47  ;;  %1901 = vmatprep.subr.bf16.mxu1 %v4033_v48  ;;  %v542_v47 = vld [vmem:[%s6340_s1 + $0x500] sm:$0xff]  ;;  %v5250_v61 = vpack.c.bf16 %v306_v49, %v302_v45  ;;  %v5331_v45 = vld [vmem:[%s6340_s1 + $0x38] sm:$0xff] }
  0x3c   : > { %v546_v48 = vld [vmem:[%s6340_s1 + $0x520] sm:$0xff] }
  0x3d   : > { %v574_v26 = vld [vmem:[%s6340_s1 + $0x600] sm:$0xff] }
  0x3e   : > { %1676 = vmatpush1.bf16.msra.mxu0 %v4030_v53  ;;  %1902 = vmatpush1.bf16.msra.mxu1 %v4032_v54  ;;  %v311_v53 = vld [vmem:[%s5031_s16 + $0xc8] sm:$0xff]  ;;  %v578_v27 = vld [vmem:[%s6340_s1 + $0x620] sm:$0xff] }
  0x3f   : > { %1677 = vmatprep.subr.bf16.mxu0 %v4039_v55  ;;  %1903 = vmatprep.subr.bf16.mxu1 %v4041_v56  ;;  %v315_v54 = vld [vmem:[%s5031_s16 + $0xe8] sm:$0xff]  ;;  %v4080_v55 = vcombine.low %v535_v40, %v539_v41  ;;  %v4087_v56 = vcombine.high %v542_v47, %v546_v48  ;;  %v318_v28 = vld [vmem:[%s5031_s16 + $0x100] sm:$0xff]  ;;  %v5316_v40 = vld [vmem:[%s6340_s1 + $0x10] sm:$0xff]  ;;  %v4118_v49 = vcombine.low %v574_v26, %v578_v27 }
  0x40   : > { %v322_v29 = vld [vmem:[%s5031_s16 + $0x120] sm:$0xff]  ;;  %v5321_v41 = vld [vmem:[%s6340_s1 + $0x30] sm:$0xff] }
  0x42   : > { %1678 = vmatpush1.bf16.msra.mxu0 %v4038_v62  ;;  %1904 = vmatpush1.bf16.msra.mxu1 %v4040_v63  ;;  %v4089_v62 = vcombine.high %v543_v50, %v547_v51  ;;  %v555_v63 = vld [vmem:[%s6340_s1 + $0x568] sm:$0xff] }
  0x43   : > { %1679 = vmatprep.subr.bf16.mxu0 %v4047_v0  ;;  %1905 = vmatprep.subr.bf16.mxu1 %v4049_v1  ;;  %v5255_v0 = vpack.c.bf16 %v315_v54, %v311_v53  ;;  %v4086_v1 = vcombine.low %v542_v47, %v546_v48  ;;  %v5335_v48 = vpack.c.bf16 %v331_v37, %v327_v33  ;;  %v326_v53 = vld [vmem:[%s5031_s16 + $0x140] sm:$0xff]  ;;  %v300_v33 = vld [vmem:[%s5031_s16 + $0x70] sm:$0xff] }
  0x44   : > { %v330_v54 = vld [vmem:[%s5031_s16 + $0x160] sm:$0xff]  ;;  %v412_v37 = vld [vmem:[%s6340_s1 + $0xf0] sm:$0xff] }
  0x45   : > { %v5349_v57 = vpack.c.bf16 %v330_v54, %v326_v53  ;;  %v416_v54 = vld [vmem:[%s6340_s1 + $0x110] sm:$0xff] }
  0x46   : > { %1680 = vmatpush1.bf16.msra.mxu0 %v4046_v6  ;;  %1906 = vmatpush1.bf16.msra.mxu1 %v4048_v9  ;;  %v4088_v6 = vcombine.low %v543_v50, %v547_v51  ;;  %v4097_v9 = vcombine.high %v551_v60, %v555_v63  ;;  %v3931_v51 = vcombine.high %v5316_v40, %v5321_v41 }
  0x47   : > { %1762 = vmatprep.subr.bf16.mxu0 %v4055_v10  ;;  %1988 = vmatprep.subr.bf16.mxu1 %v4057_v11  ;;  %v323_v10 = vld [vmem:[%s5031_s16 + $0x128] sm:$0xff] }
  0x48   : > { %v559_v11 = vld [vmem:[%s6340_s1 + $0x588] sm:$0xff]  ;;  %v5291_v24 = vpack.c.bf16 %v323_v10, %v319_v8  ;;  %v288_v10 = vld [vmem:[%s5031_s16 + $0x10] sm:$0xff] }
  0x49   : > { %1682 = vmatmul.mubr.bf16.vlgmr.msra.gmra.mrb[0].mxu0 %v5169_v14  ;;  %1908 = vmatmul.mubr.bf16.vlgmr.msra.gmra.mrb[0].mxu1 %v5169_v14  ;;  %v4105_v23 = vcombine.high %v559_v11, %v563_v12 }
  0x4a   : > { %1763 = vmatpush1.bf16.msra.mxu0 %v4054_v17  ;;  %1989 = vmatpush1.bf16.msra.mxu1 %v4056_v20  ;;  %v4096_v17 = vcombine.low %v551_v60, %v555_v63  ;;  %v571_v20 = vld [vmem:[%s6340_s1 + $0x5e8] sm:$0xff]  ;;  %v334_v60 = vld [vmem:[%s5031_s16 + $0x180] sm:$0xff] }
  0x4b   : > { %1691 = vmatprep.mubr.bf16.mxu0 %v5183_v21  ;;  %1917 = vmatprep.mubr.bf16.mxu1 %v5183_v21  ;;  %v4113_v32 = vcombine.high %v567_v19, %v571_v20  ;;  %v343_v63 = vld [vmem:[%s5031_s16 + $0x1c8] sm:$0xff] }
  0x4c   : > { %1764 = vmatprep.subr.bf16.mxu0 %v4063_v22  ;;  %1990 = vmatprep.subr.bf16.mxu1 %v4065_v25  ;;  %v5289_v22 = vpack.c.bf16 %v314_v5, %v310_v4  ;;  %v4102_v25 = vcombine.low %v558_v2, %v562_v3  ;;  %v342_v4 = vld [vmem:[%s5031_s16 + $0x1c0] sm:$0xff] }
  0x4d   : > { %v346_v5 = vld [vmem:[%s5031_s16 + $0x1e0] sm:$0xff] }
  0x4e   : > { %1765 = vmatpush1.bf16.msra.mxu0 %v4062_v30  ;;  %1991 = vmatpush1.bf16.msra.mxu1 %v4064_v31  ;;  %v4104_v30 = vcombine.low %v559_v11, %v563_v12  ;;  %v4111_v31 = vcombine.high %v566_v15, %v570_v16  ;;  %v5373_v8 = vpack.c.bf16 %v346_v5, %v342_v4  ;;  %v292_v11 = vld [vmem:[%s5031_s16 + $0x30] sm:$0xff]  ;;  %v393_v15 = vld [vmem:[%s6340_s1 + $0x58] sm:$0xff] }
  0x4f   : > { %1766 = vmatprep.subr.bf16.mxu0 %v4071_v34  ;;  %1992 = vmatprep.subr.bf16.mxu1 %v4073_v35  ;;  %v575_v34 = vld [vmem:[%s6340_s1 + $0x608] sm:$0xff]  ;;  %v392_v12 = vld [vmem:[%s6340_s1 + $0x50] sm:$0xff]  ;;  %v397_v16 = vld [vmem:[%s6340_s1 + $0x78] sm:$0xff] }
  0x50   : > { %v579_v35 = vld [vmem:[%s6340_s1 + $0x628] sm:$0xff] }
  0x51   : > { %1692 = vmatmul.mubr.bf16.gmra.mrb[4].mxu0 %v5205_v36  ;;  %1918 = vmatmul.mubr.bf16.gmra.mrb[4].mxu1 %v5205_v36  ;;  %v4121_v47 = vcombine.high %v575_v34, %v579_v35  ;;  %v4120_v50 = vcombine.low %v575_v34, %v579_v35  ;;  %v408_v35 = vld [vmem:[%s6340_s1 + $0xd0] sm:$0xff] }
  0x52   : > { %1701 = vmatprep.mubr.bf16.mxu0 %v5213_v39  ;;  %1927 = vmatprep.mubr.bf16.mxu1 %v5213_v39 }
  0x53   : > { %1767 = vmatpush1.bf16.msra.mxu0 %v4070_v42  ;;  %1993 = vmatpush1.bf16.msra.mxu1 %v4072_v43  ;;  %v4112_v42 = vcombine.low %v567_v19, %v571_v20  ;;  %v4119_v43 = vcombine.high %v574_v26, %v578_v27  ;;  %v5399_v19 = vpack.c.bf16 %v292_v11, %v288_v10  ;;  %v428_v10 = vld [vmem:[%s6340_s1 + $0x170] sm:$0xff]  ;;  %v425_v11 = vld [vmem:[%s6340_s1 + $0x158] sm:$0xff] }
  0x54   : > { %1768 = vmatprep.subr.bf16.mxu0 %v4079_v44  ;;  %1994 = vmatprep.subr.bf16.mxu1 %v4081_v46  ;;  %v5326_v44 = vld [vmem:[%s6340_s1 + $0x18] sm:$0xff]  ;;  %v5333_v46 = vpack.c.bf16 %v322_v29, %v318_v28  ;;  %v3930_v20 = vcombine.low %v5316_v40, %v5321_v41 }
  0x55   : > { %v3932_v26 = vcombine.low %v5326_v44, %v5331_v45  ;;  %v401_v28 = vld [vmem:[%s6340_s1 + $0x98] sm:$0xff] }
  0x56   : > { %v405_v29 = vld [vmem:[%s6340_s1 + $0xb8] sm:$0xff] }
  0x57   : > { %1769 = vmatpush1.bf16.msra.mxu0 %v4078_v52  ;;  %1995 = vmatpush1.bf16.msra.mxu1 %v4080_v55  ;;  %v3933_v52 = vcombine.high %v5326_v44, %v5331_v45  ;;  %v335_v55 = vld [vmem:[%s5031_s16 + $0x188] sm:$0xff]  ;;  %v409_v41 = vld [vmem:[%s6340_s1 + $0xd8] sm:$0xff]  ;;  %v3949_v45 = vcombine.high %v401_v28, %v405_v29 }
  0x58   : > { %1770 = vmatprep.subr.bf16.mxu0 %v4087_v56  ;;  %1996 = vmatprep.subr.bf16.mxu1 %v4089_v62  ;;  %v339_v56 = vld [vmem:[%s5031_s16 + $0x1a8] sm:$0xff]  ;;  %v338_v62 = vld [vmem:[%s5031_s16 + $0x1a0] sm:$0xff]  ;;  %v309_v44 = vld [vmem:[%s5031_s16 + $0xb8] sm:$0xff] }
  0x59   : > { %1702 = vmatmul.mubr.bf16.gmra.mrb[8].mxu0 %v5250_v61  ;;  %1928 = vmatmul.mubr.bf16.gmra.mrb[8].mxu1 %v5250_v61  ;;  %v5351_v59 = vpack.c.bf16 %v339_v56, %v335_v55  ;;  %v5361_v2 = vpack.c.bf16 %v338_v62, %v334_v60  ;;  %v420_v55 = vld [vmem:[%s6340_s1 + $0x130] sm:$0xff]  ;;  %v417_v56 = vld [vmem:[%s6340_s1 + $0x118] sm:$0xff]  ;;  %v3954_v62 = vcombine.low %v408_v35, %v412_v37 }
  0x5a   : > { %1711 = vmatprep.mubr.bf16.mxu0 %v5255_v0  ;;  %1937 = vmatprep.mubr.bf16.mxu1 %v5255_v0  ;;  %v421_v60 = vld [vmem:[%s6340_s1 + $0x138] sm:$0xff]  ;;  %v3963_v5 = vcombine.high %v416_v54, %v420_v55 }
  0x5b   : > { %1771 = vmatpush1.bf16.msra.mxu0 %v4086_v1  ;;  %1997 = vmatpush1.bf16.msra.mxu1 %v4088_v6  ;;  %v347_v1 = vld [vmem:[%s5031_s16 + $0x1e8] sm:$0xff]  ;;  %v289_v6 = vld [vmem:[%s5031_s16 + $0x18] sm:$0xff] }
  0x5c   : > { %1772 = vmatprep.subr.bf16.mxu0 %v4095_v7  ;;  %1998 = vmatprep.subr.bf16.mxu1 %v4097_v9  ;;  %v5363_v3 = vpack.c.bf16 %v347_v1, %v343_v63  ;;  %v293_v7 = vld [vmem:[%s5031_s16 + $0x38] sm:$0xff]  ;;  %v304_v63 = vld [vmem:[%s5031_s16 + $0x90] sm:$0xff] }
  0x5d   : > { %v5375_v9 = vpack.c.bf16 %v293_v7, %v289_v6  ;;  %v308_v1 = vld [vmem:[%s5031_s16 + $0xb0] sm:$0xff]  ;;  %v3965_v6 = vcombine.high %v417_v56, %v421_v60 }
  0x5e   : > { %v424_v7 = vld [vmem:[%s6340_s1 + $0x150] sm:$0xff] }
  0x5f   : > { %1773 = vmatpush1.bf16.msra.mxu0 %v4094_v13  ;;  %1999 = vmatpush1.bf16.msra.mxu1 %v4096_v17  ;;  %v396_v13 = vld [vmem:[%s6340_s1 + $0x70] sm:$0xff]  ;;  %v297_v17 = vld [vmem:[%s5031_s16 + $0x58] sm:$0xff] }
  0x60   : > { %1774 = vmatprep.subr.bf16.mxu0 %v4103_v18  ;;  %2000 = vmatprep.subr.bf16.mxu1 %v4105_v23  ;;  %v301_v18 = vld [vmem:[%s5031_s16 + $0x78] sm:$0xff]  ;;  %v400_v23 = vld [vmem:[%s6340_s1 + $0x90] sm:$0xff]  ;;  %v3939_v27 = vcombine.high %v392_v12, %v396_v13  ;;  %v3938_v34 = vcombine.low %v392_v12, %v396_v13  ;;  %v5474_v12 = vpack.c.bf16 %v308_v1, %v304_v63 }
  0x61   : > { %1712 = vmatmul.mubr.bf16.gmra.mrb[12].mxu0 %v5289_v22  ;;  %1938 = vmatmul.mubr.bf16.gmra.mrb[12].mxu1 %v5289_v22  ;;  %v429_v13 = vld [vmem:[%s6340_s1 + $0x178] sm:$0xff]  ;;  %v320_v1 = vld [vmem:[%s5031_s16 + $0x110] sm:$0xff] }
  0x62   : > { %1721 = vmatprep.mubr.bf16.mxu0 %v5291_v24  ;;  %1947 = vmatprep.mubr.bf16.mxu1 %v5291_v24 }
  0x63   : > { %1775 = vmatpush1.bf16.msra.mxu0 %v4102_v25  ;;  %2001 = vmatpush1.bf16.msra.mxu1 %v4104_v30  ;;  %v404_v25 = vld [vmem:[%s6340_s1 + $0xb0] sm:$0xff]  ;;  %v3941_v30 = vcombine.high %v393_v15, %v397_v16 }
  0x64   : > { %1776 = vmatprep.subr.bf16.mxu0 %v4111_v31  ;;  %2002 = vmatprep.subr.bf16.mxu1 %v4113_v32  ;;  %v5417_v31 = vpack.c.bf16 %v301_v18, %v297_v17  ;;  %v296_v32 = vld [vmem:[%s5031_s16 + $0x50] sm:$0xff]  ;;  %v3947_v40 = vcombine.high %v400_v23, %v404_v25  ;;  %v3962_v17 = vcombine.low %v416_v54, %v420_v55 }
  0x65   : > { %v3964_v18 = vcombine.low %v417_v56, %v421_v60  ;;  %v448_v55 = vld [vmem:[%s6340_s1 + $0x210] sm:$0xff]  ;;  %v449_v60 = vld [vmem:[%s6340_s1 + $0x218] sm:$0xff] }
  0x66   : > { %v452_v56 = vld [vmem:[%s6340_s1 + $0x230] sm:$0xff] }
  0x67   : > { %1777 = vmatpush1.bf16.msra.mxu0 %v4110_v38  ;;  %2003 = vmatpush1.bf16.msra.mxu1 %v4112_v42  ;;  %v3940_v38 = vcombine.low %v393_v15, %v397_v16  ;;  %v413_v42 = vld [vmem:[%s6340_s1 + $0xf8] sm:$0xff] }
  0x68   : > { %1778 = vmatprep.subr.bf16.mxu0 %v4119_v43  ;;  %2004 = vmatprep.subr.bf16.mxu1 %v4121_v47  ;;  %v305_v43 = vld [vmem:[%s5031_s16 + $0x98] sm:$0xff]  ;;  %v5441_v47 = vpack.c.bf16 %v300_v33, %v296_v32  ;;  %v3956_v4 = vcombine.low %v409_v41, %v413_v42  ;;  %v312_v32 = vld [vmem:[%s5031_s16 + $0xd0] sm:$0xff] }
  0x69   : > { %1722 = vmatmul.mubr.bf16.gmra.mrb[16].mxu0 %v5333_v46  ;;  %1948 = vmatmul.mubr.bf16.gmra.mrb[16].mxu1 %v5333_v46  ;;  %v5443_v53 = vpack.c.bf16 %v309_v44, %v305_v43  ;;  %v313_v15 = vld [vmem:[%s5031_s16 + $0xd8] sm:$0xff]  ;;  %v316_v33 = vld [vmem:[%s5031_s16 + $0xf0] sm:$0xff] }
  0x6a   : > { %1731 = vmatprep.mubr.bf16.mxu0 %v5335_v48  ;;  %1957 = vmatprep.mubr.bf16.mxu1 %v5335_v48  ;;  %v317_v16 = vld [vmem:[%s5031_s16 + $0xf8] sm:$0xff] }
  0x6b   : > { %1779 = vmatpush1.bf16.msra.mxu0 %v4118_v49  ;;  %2005 = vmatpush1.bf16.msra.mxu1 %v4120_v50  ;;  %v3946_v49 = vcombine.low %v400_v23, %v404_v25  ;;  %v3948_v50 = vcombine.low %v401_v28, %v405_v29  ;;  %v3973_v23 = vcombine.high %v425_v11, %v429_v13  ;;  %v433_v28 = vld [vmem:[%s6340_s1 + $0x198] sm:$0xff] }
  0x6c   : > { %2101 = vmatprep.subr.bf16.mxu0 %v3931_v51  ;;  %2327 = vmatprep.subr.bf16.mxu1 %v3933_v52  ;;  %v3955_v51 = vcombine.high %v408_v35, %v412_v37  ;;  %v3957_v52 = vcombine.high %v409_v41, %v413_v42  ;;  %v5481_v25 = vpack.c.bf16 %v317_v16, %v313_v15  ;;  %v437_v29 = vld [vmem:[%s6340_s1 + $0x1b8] sm:$0xff] }
  0x6d   : > { %v3981_v37 = vcombine.high %v433_v28, %v437_v29  ;;  %v441_v41 = vld [vmem:[%s6340_s1 + $0x1d8] sm:$0xff]  ;;  %v5512_v42 = vpack.c.bf16 %v316_v33, %v312_v32 }
  0x6e   : > { %v445_v43 = vld [vmem:[%s6340_s1 + $0x1f8] sm:$0xff] }
  0x6f   : > { %v321_v44 = vld [vmem:[%s5031_s16 + $0x118] sm:$0xff] }
  0x70   : > { %v461_v16 = vld [vmem:[%s6340_s1 + $0x278] sm:$0xff] }
  0x71   : > { %1732 = vmatmul.mubr.bf16.gmra.mrb[20].mxu0 %v5349_v57  ;;  %1958 = vmatmul.mubr.bf16.gmra.mrb[20].mxu1 %v5349_v57  ;;  %v465_v32 = vld [vmem:[%s6340_s1 + $0x298] sm:$0xff] }
  0x72   : > { %1741 = vmatprep.mubr.bf16.mxu0 %v5351_v59  ;;  %1967 = vmatprep.mubr.bf16.mxu1 %v5351_v59  ;;  %v469_v33 = vld [vmem:[%s6340_s1 + $0x2b8] sm:$0xff] }
  0x79   : > { %1742 = vmatmul.mubr.bf16.gmra.mrb[24].mxu0 %v5361_v2  ;;  %1968 = vmatmul.mubr.bf16.gmra.mrb[24].mxu1 %v5361_v2 }
  0x7a   : > { %1751 = vmatprep.mubr.bf16.mxu0 %v5363_v3  ;;  %1977 = vmatprep.mubr.bf16.mxu1 %v5363_v3 }
  0x81   : > { %1752 = vmatmul.mubr.bf16.gmra.mrb[28].mxu0 %v5373_v8  ;;  %1978 = vmatmul.mubr.bf16.gmra.mrb[28].mxu1 %v5373_v8 }
  0x82   : > { %4126 = vmatprep.mubr.msk.bf16.mxu0 %vm1624_vm0, %v5375_v9  ;;  %4134 = vmatprep.mubr.msk.bf16.mxu1 %vm1624_vm0, %v5375_v9 }
  0x89   : > { %1795 = vmatmul.mubr.bf16.vlgmr.msra.gmra.mrb[0].mxu0 %v5399_v19  ;;  %2021 = vmatmul.mubr.bf16.vlgmr.msra.gmra.mrb[0].mxu1 %v5399_v19 }
  0x8a   : > { %2102 = vmatpush1.bf16.msra.mxu0 %v3930_v20  ;;  %2328 = vmatpush1.bf16.msra.mxu1 %v3932_v26  ;;  %v3971_v20 = vcombine.high %v424_v7, %v428_v10  ;;  %v432_v26 = vld [vmem:[%s6340_s1 + $0x190] sm:$0xff] }
  0x8b   : > { %2103 = vmatprep.subr.bf16.mxu0 %v3939_v27  ;;  %2329 = vmatprep.subr.bf16.mxu1 %v3941_v30  ;;  %v436_v27 = vld [vmem:[%s6340_s1 + $0x1b0] sm:$0xff]  ;;  %v3970_v30 = vcombine.low %v424_v7, %v428_v10 }
  0x8c   : > { %4127 = vmatprep.mubr.msk.bf16.mxu0 %vm1624_vm0, %v5417_v31  ;;  %4135 = vmatprep.mubr.msk.bf16.mxu1 %vm1624_vm0, %v5417_v31  ;;  %v3979_v35 = vcombine.high %v432_v26, %v436_v27  ;;  %v456_v10 = vld [vmem:[%s6340_s1 + $0x250] sm:$0xff] }
  0x8e   : > { %2104 = vmatpush1.bf16.msra.mxu0 %v3938_v34  ;;  %2330 = vmatpush1.bf16.msra.mxu1 %v3940_v38  ;;  %v3972_v34 = vcombine.low %v425_v11, %v429_v13  ;;  %v440_v38 = vld [vmem:[%s6340_s1 + $0x1d0] sm:$0xff]  ;;  %v457_v13 = vld [vmem:[%s6340_s1 + $0x258] sm:$0xff] }
  0x8f   : > { %2105 = vmatprep.subr.bf16.mxu0 %v3947_v40  ;;  %2331 = vmatprep.subr.bf16.mxu1 %v3949_v45  ;;  %v444_v40 = vld [vmem:[%s6340_s1 + $0x1f0] sm:$0xff]  ;;  %v325_v45 = vld [vmem:[%s5031_s16 + $0x138] sm:$0xff] }
  0x90   : > { %v5519_v54 = vpack.c.bf16 %v325_v45, %v321_v44  ;;  %v3986_v63 = vcombine.low %v440_v38, %v444_v40  ;;  %v460_v11 = vld [vmem:[%s6340_s1 + $0x270] sm:$0xff]  ;;  %v473_v45 = vld [vmem:[%s6340_s1 + $0x2d8] sm:$0xff] }
  0x91   : > { %1805 = vmatmul.mubr.bf16.gmra.mrb[4].mxu0 %v5441_v47  ;;  %2031 = vmatmul.mubr.bf16.gmra.mrb[4].mxu1 %v5441_v47  ;;  %v476_v44 = vld [vmem:[%s6340_s1 + $0x2f0] sm:$0xff] }
  0x92   : > { %2106 = vmatpush1.bf16.msra.mxu0 %v3946_v49  ;;  %2332 = vmatpush1.bf16.msra.mxu1 %v3948_v50  ;;  %v3978_v49 = vcombine.low %v432_v26, %v436_v27  ;;  %v3980_v50 = vcombine.low %v433_v28, %v437_v29  ;;  %v4003_v26 = vcombine.high %v456_v10, %v460_v11  ;;  %v464_v29 = vld [vmem:[%s6340_s1 + $0x290] sm:$0xff] }
  0x93   : > { %2107 = vmatprep.subr.bf16.mxu0 %v3955_v51  ;;  %2333 = vmatprep.subr.bf16.mxu1 %v3957_v52  ;;  %v3987_v51 = vcombine.high %v440_v38, %v444_v40  ;;  %v3989_v52 = vcombine.high %v441_v41, %v445_v43  ;;  %v4005_v27 = vcombine.high %v457_v13, %v461_v16 }
  0x94   : > { %4128 = vmatprep.mubr.msk.bf16.mxu0 %vm1624_vm0, %v5443_v53  ;;  %4136 = vmatprep.mubr.msk.bf16.mxu1 %vm1624_vm0, %v5443_v53  ;;  %v4004_v38 = vcombine.low %v457_v13, %v461_v16 }
  0x96   : > { %2108 = vmatpush1.bf16.msra.mxu0 %v3954_v62  ;;  %2334 = vmatpush1.bf16.msra.mxu1 %v3956_v4  ;;  %v453_v62 = vld [vmem:[%s6340_s1 + $0x238] sm:$0xff]  ;;  %v324_v4 = vld [vmem:[%s5031_s16 + $0x130] sm:$0xff] }
  0x97   : > { %2109 = vmatprep.subr.bf16.mxu0 %v3963_v5  ;;  %2335 = vmatprep.subr.bf16.mxu1 %v3965_v6  ;;  %v3988_v5 = vcombine.low %v441_v41, %v445_v43  ;;  %v3995_v6 = vcombine.high %v448_v55, %v452_v56  ;;  %v3997_v7 = vcombine.high %v449_v60, %v453_v62  ;;  %v472_v43 = vld [vmem:[%s6340_s1 + $0x2d0] sm:$0xff] }
  0x98   : > { %v5550_v15 = vpack.c.bf16 %v324_v4, %v320_v1  ;;  %v4013_v41 = vcombine.high %v465_v32, %v469_v33  ;;  %v480_v1 = vld [vmem:[%s6340_s1 + $0x310] sm:$0xff] }
  0x99   : > { %1815 = vmatmul.mubr.bf16.gmra.mrb[8].mxu0 %v5474_v12  ;;  %2041 = vmatmul.mubr.bf16.gmra.mrb[8].mxu1 %v5474_v12  ;;  %v484_v4 = vld [vmem:[%s6340_s1 + $0x330] sm:$0xff] }
  0x9a   : > { %2110 = vmatpush1.bf16.msra.mxu0 %v3962_v17  ;;  %2336 = vmatpush1.bf16.msra.mxu1 %v3964_v18  ;;  %v329_v17 = vld [vmem:[%s5031_s16 + $0x158] sm:$0xff]  ;;  %v4027_v16 = vcombine.high %v480_v1, %v484_v4 }
  0x9b   : > { %2111 = vmatprep.subr.bf16.mxu0 %v3971_v20  ;;  %2337 = vmatprep.subr.bf16.mxu1 %v3973_v23  ;;  %v333_v18 = vld [vmem:[%s5031_s16 + $0x178] sm:$0xff]  ;;  %v3994_v20 = vcombine.low %v448_v55, %v452_v56  ;;  %v3996_v23 = vcombine.low %v449_v60, %v453_v62  ;;  %v4012_v56 = vcombine.low %v465_v32, %v469_v33 }
  0x9c   : > { %4129 = vmatprep.mubr.msk.bf16.mxu0 %vm1624_vm0, %v5481_v25  ;;  %4137 = vmatprep.mubr.msk.bf16.mxu1 %vm1624_vm0, %v5481_v25  ;;  %v5557_v28 = vpack.c.bf16 %v333_v18, %v329_v17  ;;  %v4019_v60 = vcombine.high %v472_v43, %v476_v44  ;;  %v488_v18 = vld [vmem:[%s6340_s1 + $0x350] sm:$0xff]  ;;  %v4026_v32 = vcombine.low %v480_v1, %v484_v4  ;;  %v505_v1 = vld [vmem:[%s6340_s1 + $0x3d8] sm:$0xff] }
  0x9d   : > { %v509_v4 = vld [vmem:[%s6340_s1 + $0x3f8] sm:$0xff] }
  0x9e   : > { %2112 = vmatpush1.bf16.msra.mxu0 %v3970_v30  ;;  %2338 = vmatpush1.bf16.msra.mxu1 %v3972_v34  ;;  %v468_v30 = vld [vmem:[%s6340_s1 + $0x2b0] sm:$0xff]  ;;  %v4002_v34 = vcombine.low %v456_v10, %v460_v11 }
  0x9f   : > { %2113 = vmatprep.subr.bf16.mxu0 %v3979_v35  ;;  %2339 = vmatprep.subr.bf16.mxu1 %v3981_v37  ;;  %v328_v35 = vld [vmem:[%s5031_s16 + $0x150] sm:$0xff]  ;;  %v4011_v40 = vcombine.high %v464_v29, %v468_v30  ;;  %v4010_v55 = vcombine.low %v464_v29, %v468_v30  ;;  %v345_v29 = vld [vmem:[%s5031_s16 + $0x1d8] sm:$0xff] }
  0xa0   : > { %v332_v37 = vld [vmem:[%s5031_s16 + $0x170] sm:$0xff]  ;;  %v349_v30 = vld [vmem:[%s5031_s16 + $0x1f8] sm:$0xff] }
  0xa1   : > { %1825 = vmatmul.mubr.bf16.gmra.mrb[12].mxu0 %v5512_v42  ;;  %2051 = vmatmul.mubr.bf16.gmra.mrb[12].mxu1 %v5512_v42  ;;  %v336_v10 = vld [vmem:[%s5031_s16 + $0x190] sm:$0xff] }
  0xa2   : > { %2114 = vmatpush1.bf16.msra.mxu0 %v3978_v49  ;;  %2340 = vmatpush1.bf16.msra.mxu1 %v3980_v50  ;;  %v5588_v49 = vpack.c.bf16 %v332_v37, %v328_v35  ;;  %v477_v50 = vld [vmem:[%s6340_s1 + $0x2f8] sm:$0xff]  ;;  %v340_v11 = vld [vmem:[%s5031_s16 + $0x1b0] sm:$0xff]  ;;  %v5633_v37 = vpack.c.bf16 %v349_v30, %v345_v29 }
  0xa3   : > { %2115 = vmatprep.subr.bf16.mxu0 %v3987_v51  ;;  %2341 = vmatprep.subr.bf16.mxu1 %v3989_v52  ;;  %v337_v51 = vld [vmem:[%s5031_s16 + $0x198] sm:$0xff]  ;;  %v4021_v62 = vcombine.high %v473_v45, %v477_v50  ;;  %v4020_v13 = vcombine.low %v473_v45, %v477_v50  ;;  %v344_v45 = vld [vmem:[%s5031_s16 + $0x1d0] sm:$0xff] }
  0xa4   : > { %4130 = vmatprep.mubr.msk.bf16.mxu0 %vm1624_vm0, %v5519_v54  ;;  %4138 = vmatprep.mubr.msk.bf16.mxu1 %vm1624_vm0, %v5519_v54  ;;  %v341_v52 = vld [vmem:[%s5031_s16 + $0x1b8] sm:$0xff]  ;;  %v348_v50 = vld [vmem:[%s5031_s16 + $0x1f0] sm:$0xff] }
  0xa5   : > { %v520_v29 = vld [vmem:[%s6340_s1 + $0x450] sm:$0xff] }
  0xa6   : > { %2116 = vmatpush1.bf16.msra.mxu0 %v3986_v63  ;;  %2342 = vmatpush1.bf16.msra.mxu1 %v3988_v5  ;;  %v5595_v63 = vpack.c.bf16 %v341_v52, %v337_v51  ;;  %v481_v5 = vld [vmem:[%s6340_s1 + $0x318] sm:$0xff]  ;;  %v524_v30 = vld [vmem:[%s6340_s1 + $0x470] sm:$0xff] }
  0xa7   : > { %2117 = vmatprep.subr.bf16.mxu0 %v3995_v6  ;;  %2343 = vmatprep.subr.bf16.mxu1 %v3997_v7  ;;  %v485_v6 = vld [vmem:[%s6340_s1 + $0x338] sm:$0xff]  ;;  %v4018_v7 = vcombine.low %v472_v43, %v476_v44 }
  0xa8   : > { %v4029_v17 = vcombine.high %v481_v5, %v485_v6  ;;  %v4028_v33 = vcombine.low %v481_v5, %v485_v6  ;;  %v501_v43 = vld [vmem:[%s6340_s1 + $0x3b8] sm:$0xff] }
  0xa9   : > { %1835 = vmatmul.mubr.bf16.gmra.mrb[16].mxu0 %v5550_v15  ;;  %2061 = vmatmul.mubr.bf16.gmra.mrb[16].mxu1 %v5550_v15 }
  0xaa   : > { %2118 = vmatpush1.bf16.msra.mxu0 %v3994_v20  ;;  %2344 = vmatpush1.bf16.msra.mxu1 %v3996_v23  ;;  %v492_v20 = vld [vmem:[%s6340_s1 + $0x370] sm:$0xff]  ;;  %v489_v23 = vld [vmem:[%s6340_s1 + $0x358] sm:$0xff] }
  0xab   : > { %2119 = vmatprep.subr.bf16.mxu0 %v4003_v26  ;;  %2345 = vmatprep.subr.bf16.mxu1 %v4005_v27  ;;  %v5626_v26 = vpack.c.bf16 %v340_v11, %v336_v10  ;;  %v493_v27 = vld [vmem:[%s6340_s1 + $0x378] sm:$0xff]  ;;  %v4034_v44 = vcombine.low %v488_v18, %v492_v20  ;;  %v4053_v10 = vcombine.high %v505_v1, %v509_v4  ;;  %v512_v11 = vld [vmem:[%s6340_s1 + $0x410] sm:$0xff] }
  0xac   : > { %4131 = vmatprep.mubr.msk.bf16.mxu0 %vm1624_vm0, %v5557_v28  ;;  %4139 = vmatprep.mubr.msk.bf16.mxu1 %vm1624_vm0, %v5557_v28  ;;  %v4037_v35 = vcombine.high %v489_v23, %v493_v27  ;;  %v4036_v51 = vcombine.low %v489_v23, %v493_v27 }
  0xae   : > { %2120 = vmatpush1.bf16.msra.mxu0 %v4002_v34  ;;  %2346 = vmatpush1.bf16.msra.mxu1 %v4004_v38  ;;  %v4035_v34 = vcombine.high %v488_v18, %v492_v20  ;;  %v496_v38 = vld [vmem:[%s6340_s1 + $0x390] sm:$0xff]  ;;  %v4052_v20 = vcombine.low %v505_v1, %v509_v4 }
  0xaf   : > { %2121 = vmatprep.subr.bf16.mxu0 %v4011_v40  ;;  %2347 = vmatprep.subr.bf16.mxu1 %v4013_v41  ;;  %v500_v40 = vld [vmem:[%s6340_s1 + $0x3b0] sm:$0xff]  ;;  %v497_v41 = vld [vmem:[%s6340_s1 + $0x398] sm:$0xff] }
  0xb0   : > { %v4043_v52 = vcombine.high %v496_v38, %v500_v40  ;;  %v4042_v5 = vcombine.low %v496_v38, %v500_v40  ;;  %v4044_v6 = vcombine.low %v497_v41, %v501_v43  ;;  %v528_v38 = vld [vmem:[%s6340_s1 + $0x490] sm:$0xff] }
  0xb1   : > { %1845 = vmatmul.mubr.bf16.gmra.mrb[20].mxu0 %v5588_v49  ;;  %2071 = vmatmul.mubr.bf16.gmra.mrb[20].mxu1 %v5588_v49  ;;  %v532_v40 = vld [vmem:[%s6340_s1 + $0x4b0] sm:$0xff] }
  0xb2   : > { %2122 = vmatpush1.bf16.msra.mxu0 %v4010_v55  ;;  %2348 = vmatpush1.bf16.msra.mxu1 %v4012_v56  ;;  %v4045_v55 = vcombine.high %v497_v41, %v501_v43  ;;  %v504_v56 = vld [vmem:[%s6340_s1 + $0x3d0] sm:$0xff]  ;;  %v529_v43 = vld [vmem:[%s6340_s1 + $0x498] sm:$0xff] }
  0xb3   : > { %2123 = vmatprep.subr.bf16.mxu0 %v4019_v60  ;;  %2349 = vmatprep.subr.bf16.mxu1 %v4021_v62  ;;  %v508_v60 = vld [vmem:[%s6340_s1 + $0x3f0] sm:$0xff]  ;;  %v5661_v62 = vpack.c.bf16 %v348_v50, %v344_v45  ;;  %v4066_v45 = vcombine.low %v520_v29, %v524_v30 }
  0xb4   : > { %4132 = vmatprep.mubr.msk.bf16.mxu0 %vm1624_vm0, %v5595_v63  ;;  %4140 = vmatprep.mubr.msk.bf16.mxu1 %vm1624_vm0, %v5595_v63  ;;  %v4050_v18 = vcombine.low %v504_v56, %v508_v60 }
  0xb6   : > { %2124 = vmatpush1.bf16.msra.mxu0 %v4018_v7  ;;  %2350 = vmatpush1.bf16.msra.mxu1 %v4020_v13  ;;  %v4051_v7 = vcombine.high %v504_v56, %v508_v60  ;;  %v516_v13 = vld [vmem:[%s6340_s1 + $0x430] sm:$0xff]  ;;  %v537_v56 = vld [vmem:[%s6340_s1 + $0x4d8] sm:$0xff]  ;;  %v4074_v60 = vcombine.low %v528_v38, %v532_v40 }
  0xb7   : > { %2125 = vmatprep.subr.bf16.mxu0 %v4027_v16  ;;  %2351 = vmatprep.subr.bf16.mxu1 %v4029_v17  ;;  %v513_v16 = vld [vmem:[%s6340_s1 + $0x418] sm:$0xff]  ;;  %v4059_v23 = vcombine.high %v512_v11, %v516_v13 }
  0xb8   : > { %v517_v17 = vld [vmem:[%s6340_s1 + $0x438] sm:$0xff] }
  0xb9   : > { %1855 = vmatmul.mubr.bf16.gmra.mrb[24].mxu0 %v5626_v26  ;;  %2081 = vmatmul.mubr.bf16.gmra.mrb[24].mxu1 %v5626_v26  ;;  %v4061_v27 = vcombine.high %v513_v16, %v517_v17 }
  0xba   : > { %2126 = vmatpush1.bf16.msra.mxu0 %v4026_v32  ;;  %2352 = vmatpush1.bf16.msra.mxu1 %v4028_v33  ;;  %v4058_v32 = vcombine.low %v512_v11, %v516_v13  ;;  %v521_v33 = vld [vmem:[%s6340_s1 + $0x458] sm:$0xff] }
  0xbb   : > { %2127 = vmatprep.subr.bf16.mxu0 %v4035_v34  ;;  %2353 = vmatprep.subr.bf16.mxu1 %v4037_v35  ;;  %v525_v34 = vld [vmem:[%s6340_s1 + $0x478] sm:$0xff]  ;;  %v4067_v35 = vcombine.high %v520_v29, %v524_v30 }
  0xbc   : > { %4133 = vmatprep.mubr.msk.bf16.mxu0 %vm1624_vm0, %v5633_v37  ;;  %4141 = vmatprep.mubr.msk.bf16.mxu1 %vm1624_vm0, %v5633_v37  ;;  %v4069_v41 = vcombine.high %v521_v33, %v525_v34  ;;  %v4068_v50 = vcombine.low %v521_v33, %v525_v34  ;;  %v549_v11 = vld [vmem:[%s6340_s1 + $0x538] sm:$0xff]  ;;  %v560_v33 = vld [vmem:[%s6340_s1 + $0x590] sm:$0xff] }
  0xbd   : > { %v564_v34 = vld [vmem:[%s6340_s1 + $0x5b0] sm:$0xff] }
  0xbe   : > { %2128 = vmatpush1.bf16.msra.mxu0 %v4034_v44  ;;  %2354 = vmatpush1.bf16.msra.mxu1 %v4036_v51  ;;  %v533_v44 = vld [vmem:[%s6340_s1 + $0x4b8] sm:$0xff]  ;;  %v4075_v51 = vcombine.high %v528_v38, %v532_v40 }
  0xbf   : > { %2129 = vmatprep.subr.bf16.mxu0 %v4043_v52  ;;  %2355 = vmatprep.subr.bf16.mxu1 %v4045_v55  ;;  %v4077_v52 = vcombine.high %v529_v43, %v533_v44  ;;  %v536_v55 = vld [vmem:[%s6340_s1 + $0x4d0] sm:$0xff]  ;;  %v4076_v1 = vcombine.low %v529_v43, %v533_v44 }
  0xc0   : > { %v568_v43 = vld [vmem:[%s6340_s1 + $0x5d0] sm:$0xff] }
  0xc1   : > { %1865 = vmatmul.mubr.bf16.gmra.mrb[28].mxu0 %v5661_v62  ;;  %2091 = vmatmul.mubr.bf16.gmra.mrb[28].mxu1 %v5661_v62  ;;  %v572_v44 = vld [vmem:[%s6340_s1 + $0x5f0] sm:$0xff] }
  0xc2   : > { %2130 = vmatpush1.bf16.msra.mxu0 %v4042_v5  ;;  %2356 = vmatpush1.bf16.msra.mxu1 %v4044_v6  ;;  %v544_v6 = vld [vmem:[%s6340_s1 + $0x510] sm:$0xff] }
  0xc3   : > { %2131 = vmatprep.subr.bf16.mxu0 %v4051_v7  ;;  %2357 = vmatprep.subr.bf16.mxu1 %v4053_v10  ;;  %v548_v7 = vld [vmem:[%s6340_s1 + $0x530] sm:$0xff]  ;;  %v545_v10 = vld [vmem:[%s6340_s1 + $0x518] sm:$0xff] }
  0xc4   : > { %2133 = vmatprep.mubr.bf16.mxu0 %v5047_v58  ;;  %2359 = vmatprep.mubr.bf16.mxu1 %v5047_v58  ;;  %v4060_v58 = vcombine.low %v513_v16, %v517_v17  ;;  %v4091_v17 = vcombine.high %v544_v6, %v548_v7  ;;  %v4092_v29 = vcombine.low %v545_v10, %v549_v11 }
  0xc6   : > { %2132 = vmatpush1.bf16.msra.mxu0 %v4050_v18  ;;  %2358 = vmatpush1.bf16.msra.mxu1 %v4052_v20  ;;  %v552_v18 = vld [vmem:[%s6340_s1 + $0x550] sm:$0xff] }
  0xc7   : > { %2214 = vmatprep.subr.bf16.mxu0 %v4059_v23  ;;  %2440 = vmatprep.subr.bf16.mxu1 %v4061_v27  ;;  %v556_v20 = vld [vmem:[%s6340_s1 + $0x570] sm:$0xff]  ;;  %v557_v23 = vld [vmem:[%s6340_s1 + $0x578] sm:$0xff]  ;;  %v4090_v27 = vcombine.low %v544_v6, %v548_v7 }
  0xc8   : > { %v4099_v30 = vcombine.high %v552_v18, %v556_v20  ;;  %v4098_v38 = vcombine.low %v552_v18, %v556_v20  ;;  %v4838_v18 = vld [vmem:[%s6342_s3 + $0xa0] sm:$0xff]   ;;  %v4839_v20 = vld [vmem:[%s6342_s3 + $0x68] sm:$0xff]  }
  0xc9   : > { %2134 = vmatmul.mubr.bf16.vlgmr.msra.gmra.mrb[32].mxu0 %v5169_v14  ;;  %2360 = vmatmul.mubr.bf16.vlgmr.msra.gmra.mrb[32].mxu1 %v5169_v14  ;;  %v540_v14 = vld [vmem:[%s6340_s1 + $0x4f0] sm:$0xff] }
  0xca   : > { %2215 = vmatpush1.bf16.msra.mxu0 %v4058_v32  ;;  %2441 = vmatpush1.bf16.msra.mxu1 %v4060_v58  ;;  %v4083_v4 = vcombine.high %v536_v55, %v540_v14  ;;  %v4082_v13 = vcombine.low %v536_v55, %v540_v14  ;;  %v561_v58 = vld [vmem:[%s6340_s1 + $0x598] sm:$0xff]  ;;  %v576_v14 = vld [vmem:[%s6340_s1 + $0x610] sm:$0xff] }
  0xcb   : > { %2143 = vmatprep.mubr.bf16.mxu0 %v5183_v21  ;;  %2369 = vmatprep.mubr.bf16.mxu1 %v5183_v21  ;;  %v541_v21 = vld [vmem:[%s6340_s1 + $0x4f8] sm:$0xff] }
  0xcc   : > { %2216 = vmatprep.subr.bf16.mxu0 %v4067_v35  ;;  %2442 = vmatprep.subr.bf16.mxu1 %v4069_v41  ;;  %v4085_v5 = vcombine.high %v537_v56, %v541_v21  ;;  %v4084_v16 = vcombine.low %v537_v56, %v541_v21  ;;  %v565_v35 = vld [vmem:[%s6340_s1 + $0x5b8] sm:$0xff]  ;;  %v4107_v41 = vcombine.high %v560_v33, %v564_v34  ;;  %v580_v56 = vld [vmem:[%s6340_s1 + $0x630] sm:$0xff] }
  0xcd   : > { %v577_v21 = vld [vmem:[%s6340_s1 + $0x618] sm:$0xff]  ;;  %v4122_v6 = vcombine.low %v576_v14, %v580_v56 }
  0xce   : > { %2217 = vmatpush1.bf16.msra.mxu0 %v4066_v45  ;;  %2443 = vmatpush1.bf16.msra.mxu1 %v4068_v50  ;;  %v573_v45 = vld [vmem:[%s6340_s1 + $0x5f8] sm:$0xff]  ;;  %v4106_v50 = vcombine.low %v560_v33, %v564_v34 }
  0xcf   : > { %2218 = vmatprep.subr.bf16.mxu0 %v4075_v51  ;;  %2444 = vmatprep.subr.bf16.mxu1 %v4077_v52  ;;  %v4108_v51 = vcombine.low %v561_v58, %v565_v35  ;;  %v4115_v52 = vcombine.high %v568_v43, %v572_v44  ;;  %v4848_v33 = vld [vmem:[%s6342_s3 + $0xf8] sm:$0xff]  }
  0xd0   : > { %v4849_v34 = vld [vmem:[%s6342_s3 + $0x38] sm:$0xff]  }
  0xd1   : > { %2144 = vmatmul.mubr.bf16.gmra.mrb[36].mxu0 %v5205_v36  ;;  %2370 = vmatmul.mubr.bf16.gmra.mrb[36].mxu1 %v5205_v36  ;;  %v4093_v36 = vcombine.high %v545_v10, %v549_v11  ;;  %v4819_v10 = vld [vmem:[%s6342_s3 + $0x40] sm:$0xff]   ;;  %v4831_v11 = vld [vmem:[%s6342_s3 + $0x58] sm:$0xff]  }
  0xd2   : > { %2153 = vmatprep.mubr.bf16.mxu0 %v5213_v39  ;;  %2379 = vmatprep.mubr.bf16.mxu1 %v5213_v39  ;;  %v553_v39 = vld [vmem:[%s6340_s1 + $0x558] sm:$0xff] }
  0xd3   : > { %2219 = vmatpush1.bf16.msra.mxu0 %v4074_v60  ;;  %2445 = vmatpush1.bf16.msra.mxu1 %v4076_v1  ;;  %v4101_v32 = vcombine.high %v553_v39, %v557_v23  ;;  %v4100_v40 = vcombine.low %v553_v39, %v557_v23  ;;  %v581_v60 = vld [vmem:[%s6340_s1 + $0x638] sm:$0xff]  ;;  %v4114_v1 = vcombine.low %v568_v43, %v572_v44  ;;  %v4840_v39 = vld [vmem:[%s6342_s3 + $0xe8] sm:$0xff]  }
  0xd4   : > { %2220 = vmatprep.subr.bf16.mxu0 %v4083_v4  ;;  %2446 = vmatprep.subr.bf16.mxu1 %v4085_v5  ;;  %v4123_v5 = vcombine.high %v576_v14, %v580_v56  ;;  %v4124_v7 = vcombine.low %v577_v21, %v581_v60  ;;  %v4841_v23 = vld [vmem:[%s6342_s3 + $0x28] sm:$0xff]  }
  0xd7   : > { %2221 = vmatpush1.bf16.msra.mxu0 %v4082_v13  ;;  %2447 = vmatpush1.bf16.msra.mxu1 %v4084_v16  ;;  %v4832_v13 = vld [vmem:[%s6342_s3 + $0xd8] sm:$0xff]  }
  0xd8   : > { %2222 = vmatprep.subr.bf16.mxu0 %v4091_v17  ;;  %2448 = vmatprep.subr.bf16.mxu1 %v4093_v36  ;;  %v4833_v16 = vld [vmem:[%s6342_s3 + $0x18] sm:$0xff]   ;;  %v4837_v36 = vld [vmem:[%s6342_s3 + $0x20] sm:$0xff]  }
  0xd9   : > { %2154 = vmatmul.mubr.bf16.gmra.mrb[40].mxu0 %v5250_v61  ;;  %2380 = vmatmul.mubr.bf16.gmra.mrb[40].mxu1 %v5250_v61  ;;  %v4109_v61 = vcombine.high %v561_v58, %v565_v35  ;;  %v4834_v17 = vld [vmem:[%s6342_s3 + $0x98] sm:$0xff]  }
  0xda   : > { %2163 = vmatprep.mubr.bf16.mxu0 %v5255_v0  ;;  %2389 = vmatprep.mubr.bf16.mxu1 %v5255_v0  ;;  %v569_v0 = vld [vmem:[%s6340_s1 + $0x5d8] sm:$0xff] }
  0xdb   : > { %2223 = vmatpush1.bf16.msra.mxu0 %v4090_v27  ;;  %2449 = vmatpush1.bf16.msra.mxu1 %v4092_v29  ;;  %v4117_v55 = vcombine.high %v569_v0, %v573_v45  ;;  %v4116_v4 = vcombine.low %v569_v0, %v573_v45  ;;  %v4842_v27 = vld [vmem:[%s6342_s3 + $0xa8] sm:$0xff]   ;;  %v4845_v29 = vld [vmem:[%s6342_s3 + $0x30] sm:$0xff]   ;;  %v4850_v58 = vld [vmem:[%s6342_s3 + $0xb8] sm:$0xff]  }
  0xdc   : > { %2224 = vmatprep.subr.bf16.mxu0 %v4099_v30  ;;  %2450 = vmatprep.subr.bf16.mxu1 %v4101_v32  ;;  %v4846_v30 = vld [vmem:[%s6342_s3 + $0xb0] sm:$0xff]   ;;  %v4847_v32 = vld [vmem:[%s6342_s3 + $0x78] sm:$0xff]  }
  0xdf   : > { %2225 = vmatpush1.bf16.msra.mxu0 %v4098_v38  ;;  %2451 = vmatpush1.bf16.msra.mxu1 %v4100_v40 }
  0xe0   : > { %2226 = vmatprep.subr.bf16.mxu0 %v4107_v41  ;;  %2452 = vmatprep.subr.bf16.mxu1 %v4109_v61 }
  0xe1   : > { %2164 = vmatmul.mubr.bf16.gmra.mrb[44].mxu0 %v5289_v22  ;;  %2390 = vmatmul.mubr.bf16.gmra.mrb[44].mxu1 %v5289_v22  ;;  %v4125_v22 = vcombine.high %v577_v21, %v581_v60 }
  0xe2   : > { %2173 = vmatprep.mubr.bf16.mxu0 %v5291_v24  ;;  %2399 = vmatprep.mubr.bf16.mxu1 %v5291_v24  ;;  %v4820_v24 = vld [vmem:[%s6342_s3 + $0xc0] sm:$0xff]  }
  0xe3   : > { %2227 = vmatpush1.bf16.msra.mxu0 %v4106_v50  ;;  %2453 = vmatpush1.bf16.msra.mxu1 %v4108_v51 }
  0xe4   : > { %2228 = vmatprep.subr.bf16.mxu0 %v4115_v52  ;;  %2454 = vmatprep.subr.bf16.mxu1 %v4117_v55 }
  0xe7   : > { %2229 = vmatpush1.bf16.msra.mxu0 %v4114_v1  ;;  %2455 = vmatpush1.bf16.msra.mxu1 %v4116_v4 }
  0xe8   : > { %2230 = vmatprep.subr.bf16.mxu0 %v4123_v5  ;;  %2456 = vmatprep.subr.bf16.mxu1 %v4125_v22 }
  0xe9   : > { %2174 = vmatmul.mubr.bf16.gmra.mrb[48].mxu0 %v5333_v46  ;;  %2400 = vmatmul.mubr.bf16.gmra.mrb[48].mxu1 %v5333_v46  ;;  %v4821_v46 = vld [vmem:[%s6342_s3] sm:$0xff]  }
  0xea   : > { %2183 = vmatprep.mubr.bf16.mxu0 %v5335_v48  ;;  %2409 = vmatprep.mubr.bf16.mxu1 %v5335_v48  ;;  %v4822_v48 = vld [vmem:[%s6342_s3 + $0x80] sm:$0xff]  }
  0xeb   : > { %2231 = vmatpush1.bf16.msra.mxu0 %v4122_v6  ;;  %2457 = vmatpush1.bf16.msra.mxu1 %v4124_v7 }
  0xec   : > { %4235 = vmatprep.subr.bf16.mxu0 %v4819_v10  ;;  %4299 = vmatprep.subr.bf16.mxu1 %v4820_v24 }
  0xf1   : > { %2184 = vmatmul.mubr.bf16.gmra.mrb[52].mxu0 %v5349_v57  ;;  %2410 = vmatmul.mubr.bf16.gmra.mrb[52].mxu1 %v5349_v57  ;;  %v4823_v57 = vld [vmem:[%s6342_s3 + $0x48] sm:$0xff]  }
  0xf2   : > { %2193 = vmatprep.mubr.bf16.mxu0 %v5351_v59  ;;  %2419 = vmatprep.mubr.bf16.mxu1 %v5351_v59  ;;  %v4824_v59 = vld [vmem:[%s6342_s3 + $0xc8] sm:$0xff]  }
  0xf9   : > { %2194 = vmatmul.mubr.bf16.gmra.mrb[56].mxu0 %v5361_v2  ;;  %2420 = vmatmul.mubr.bf16.gmra.mrb[56].mxu1 %v5361_v2  ;;  %v4825_v2 = vld [vmem:[%s6342_s3 + $0x8] sm:$0xff]  }
  0xfa   : > { %2203 = vmatprep.mubr.bf16.mxu0 %v5363_v3  ;;  %2429 = vmatprep.mubr.bf16.mxu1 %v5363_v3  ;;  %v4826_v3 = vld [vmem:[%s6342_s3 + $0x88] sm:$0xff]  }
 0x101   : > { %2204 = vmatmul.mubr.bf16.gmra.mrb[60].mxu0 %v5373_v8  ;;  %2430 = vmatmul.mubr.bf16.gmra.mrb[60].mxu1 %v5373_v8  ;;  %v4827_v8 = vld [vmem:[%s6342_s3 + $0x50] sm:$0xff]  }
 0x102   : > { %4142 = vmatprep.mubr.msk.bf16.mxu0 %vm1624_vm0, %v5375_v9  ;;  %4150 = vmatprep.mubr.msk.bf16.mxu1 %vm1624_vm0, %v5375_v9  ;;  %v4828_v9 = vld [vmem:[%s6342_s3 + $0xd0] sm:$0xff]  }
 0x109   : > { %2247 = vmatmul.mubr.bf16.vlgmr.msra.gmra.mrb[32].mxu0 %v5399_v19  ;;  %2473 = vmatmul.mubr.bf16.vlgmr.msra.gmra.mrb[32].mxu1 %v5399_v19  ;;  %v4829_v19 = vld [vmem:[%s6342_s3 + $0x10] sm:$0xff]  }
 0x10a   : > { %4143 = vmatprep.mubr.msk.bf16.mxu0 %vm1624_vm0, %v5417_v31  ;;  %4151 = vmatprep.mubr.msk.bf16.mxu1 %vm1624_vm0, %v5417_v31  ;;  %v4830_v31 = vld [vmem:[%s6342_s3 + $0x90] sm:$0xff]  }
 0x10b   : > { %4236 = vmatpush3.bf16.msra.mxu0 %v4821_v46  ;;  %4300 = vmatpush3.bf16.msra.mxu1 %v4822_v48 }
 0x10c   : > { %4237 = vmatprep.subr.bf16.mxu0 %v4823_v57  ;;  %4301 = vmatprep.subr.bf16.mxu1 %v4824_v59 }
 0x10f   : > { %4238 = vmatpush3.bf16.msra.mxu0 %v4825_v2  ;;  %4302 = vmatpush3.bf16.msra.mxu1 %v4826_v3 }
 0x110   : > { %4239 = vmatprep.subr.bf16.mxu0 %v4827_v8  ;;  %4303 = vmatprep.subr.bf16.mxu1 %v4828_v9  ;;  %v4852_v9 = vld [vmem:[%s6342_s3 + $0x100] sm:$0xff]  }
 0x111   : > { %2257 = vmatmul.mubr.bf16.gmra.mrb[36].mxu0 %v5441_v47  ;;  %2483 = vmatmul.mubr.bf16.gmra.mrb[36].mxu1 %v5441_v47  ;;  %v4835_v47 = vld [vmem:[%s6342_s3 + $0x60] sm:$0xff]  }
 0x112   : > { %4144 = vmatprep.mubr.msk.bf16.mxu0 %vm1624_vm0, %v5443_v53  ;;  %4152 = vmatprep.mubr.msk.bf16.mxu1 %vm1624_vm0, %v5443_v53  ;;  %v4836_v53 = vld [vmem:[%s6342_s3 + $0xe0] sm:$0xff]  }
 0x113   : > { %4240 = vmatpush3.bf16.msra.mxu0 %v4829_v19  ;;  %4304 = vmatpush3.bf16.msra.mxu1 %v4830_v31 }
 0x114   : > { %4241 = vmatprep.subr.bf16.mxu0 %v4831_v11  ;;  %4305 = vmatprep.subr.bf16.mxu1 %v4832_v13 }
 0x117   : > { %4242 = vmatpush3.bf16.msra.mxu0 %v4833_v16  ;;  %4306 = vmatpush3.bf16.msra.mxu1 %v4834_v17  ;;  %v4854_v16 = vld [vmem:[%s6342_s3 + $0x180] sm:$0xff]   ;;  %v4855_v17 = vld [vmem:[%s6342_s3 + $0x148] sm:$0xff]  }
 0x118   : > { %4243 = vmatprep.subr.bf16.mxu0 %v4835_v47  ;;  %4307 = vmatprep.subr.bf16.mxu1 %v4836_v53 }
 0x119   : > { %2267 = vmatmul.mubr.bf16.gmra.mrb[40].mxu0 %v5474_v12  ;;  %2493 = vmatmul.mubr.bf16.gmra.mrb[40].mxu1 %v5474_v12  ;;  %v4843_v12 = vld [vmem:[%s6342_s3 + $0x70] sm:$0xff]  }
 0x11a   : > { %4145 = vmatprep.mubr.msk.bf16.mxu0 %vm1624_vm0, %v5481_v25  ;;  %4153 = vmatprep.mubr.msk.bf16.mxu1 %vm1624_vm0, %v5481_v25  ;;  %v4844_v25 = vld [vmem:[%s6342_s3 + $0xf0] sm:$0xff]  }
 0x11b   : > { %4244 = vmatpush3.bf16.msra.mxu0 %v4837_v36  ;;  %4308 = vmatpush3.bf16.msra.mxu1 %v4838_v18 }
 0x11c   : > { %4245 = vmatprep.subr.bf16.mxu0 %v4839_v20  ;;  %4309 = vmatprep.subr.bf16.mxu1 %v4840_v39  ;;  %v4857_v20 = vld [vmem:[%s6342_s3 + $0x1c8] sm:$0xff]  }
 0x11f   : > { %4246 = vmatpush3.bf16.msra.mxu0 %v4841_v23  ;;  %4310 = vmatpush3.bf16.msra.mxu1 %v4842_v27 }
 0x120   : > { %4247 = vmatprep.subr.bf16.mxu0 %v4843_v12  ;;  %4311 = vmatprep.subr.bf16.mxu1 %v4844_v25 }
 0x121   : > { %2277 = vmatmul.mubr.bf16.gmra.mrb[44].mxu0 %v5512_v42  ;;  %2503 = vmatmul.mubr.bf16.gmra.mrb[44].mxu1 %v5512_v42  ;;  %v4851_v42 = vld [vmem:[%s6342_s3 + $0x140] sm:$0xff]  }
 0x122   : > { %4146 = vmatprep.mubr.msk.bf16.mxu0 %vm1624_vm0, %v5519_v54  ;;  %4154 = vmatprep.mubr.msk.bf16.mxu1 %vm1624_vm0, %v5519_v54  ;;  %v4853_v54 = vld [vmem:[%s6342_s3 + $0x1c0] sm:$0xff]  }
 0x123   : > { %4248 = vmatpush3.bf16.msra.mxu0 %v4845_v29  ;;  %4312 = vmatpush3.bf16.msra.mxu1 %v4846_v30 }
 0x124   : > { %4249 = vmatprep.subr.bf16.mxu0 %v4847_v32  ;;  %4313 = vmatprep.subr.bf16.mxu1 %v4848_v33  ;;  %v4856_v32 = vld [vmem:[%s6342_s3 + $0x108] sm:$0xff]  }
 0x127   : > { %4250 = vmatpush3.bf16.msra.mxu0 %v4849_v34  ;;  %4314 = vmatpush3.bf16.msra.mxu1 %v4850_v58 }
 0x128   : > { %4363 = vmatprep.subr.bf16.mxu0 %v4851_v42  ;;  %4427 = vmatprep.subr.bf16.mxu1 %v4853_v54  ;;  %v4858_v42 = vld [vmem:[%s6342_s3 + $0x188] sm:$0xff]   ;;  %v4859_v54 = vld [vmem:[%s6342_s3 + $0x150] sm:$0xff]  }
 0x129   : > { %2287 = vmatmul.mubr.bf16.gmra.mrb[48].mxu0 %v5550_v15  ;;  %2513 = vmatmul.mubr.bf16.gmra.mrb[48].mxu1 %v5550_v15  ;;  %v584_v15 = vlaneseq }
 0x12a   : > { %4147 = vmatprep.mubr.msk.bf16.mxu0 %vm1624_vm0, %v5557_v28  ;;  %4155 = vmatprep.mubr.msk.bf16.mxu1 %vm1624_vm0, %v5557_v28 }
 0x12b   : > { %v5961_v28 = vshrl.u32 %v584_v15, 7 }
 0x12d   : > { %v590_v35 = vsub.s32 1, %v5961_v28 }
 0x131   : > { %2297 = vmatmul.mubr.bf16.gmra.mrb[52].mxu0 %v5588_v49  ;;  %2523 = vmatmul.mubr.bf16.gmra.mrb[52].mxu1 %v5588_v49  ;;  %v586_v49 = vsub.s32 0, %v5961_v28 }
 0x132   : > { %4148 = vmatprep.mubr.msk.bf16.mxu0 %vm1624_vm0, %v5595_v63  ;;  %4156 = vmatprep.mubr.msk.bf16.mxu1 %vm1624_vm0, %v5595_v63  ;;  %v5967_v63 = vld [vmem:[%s6341_s2] sm:$0xff] }
 0x133   : > { %v5973_v38 = vrot.slane %v5967_v63, %v586_v49  ;;  %v5979_v40 = vrot.slane %v5967_v63, %v590_v35 }
 0x139   : > { %2307 = vmatmul.mubr.bf16.gmra.mrb[56].mxu0 %v5626_v26  ;;  %2533 = vmatmul.mubr.bf16.gmra.mrb[56].mxu1 %v5626_v26  ;;  %v594_v26 = vsub.s32 2, %v5961_v28 }
 0x13a   : > { %4149 = vmatprep.mubr.msk.bf16.mxu0 %vm1624_vm0, %v5633_v37  ;;  %4157 = vmatprep.mubr.msk.bf16.mxu1 %vm1624_vm0, %v5633_v37  ;;  %v598_v37 = vsub.s32 3, %v5961_v28 }
 0x13c   : > { %v5982_v41 = vrot.slane %v5967_v63, %v598_v37  ;;  %v4861_v37 = vld [vmem:[%s6342_s3 + $0x1d0] sm:$0xff]  }
 0x141   : > { %2317 = vmatmul.mubr.bf16.gmra.mrb[60].mxu0 %v5661_v62  ;;  %2543 = vmatmul.mubr.bf16.gmra.mrb[60].mxu1 %v5661_v62  ;;  %v5976_v62 = vrot.slane %v5967_v63, %v594_v26 }
 0x15c   : > { %v1796_v61 = vpop.f32.mrb[0].mxu0  ;;  %v2022_v44 = vpop.f32.mrb[0].mxu1 }
 0x15d   : > { %v4555_v43 = vadd.f32 %v1796_v61, %v5973_v38  ;;  %v1798_v0 = vpop.f32.mrb[1].mxu0  ;;  %v4587_v45 = vadd.f32 %v2022_v44, %v5976_v62  ;;  %v2024_v51 = vpop.f32.mrb[1].mxu1 }
 0x15e   : > { %v4556_v50 = vadd.f32 %v1798_v0, %v5979_v40  ;;  %v1800_v52 = vpop.f32.mrb[2].mxu0  ;;  %v4588_v55 = vadd.f32 %v2024_v51, %v5982_v41  ;;  %v2026_v56 = vpop.f32.mrb[2].mxu1  ;;  %v4860_v51 = vld [vmem:[%s6342_s3 + $0x110] sm:$0xff]  }
 0x15f   : > { %v4557_v14 = vadd.f32 %v1800_v52, %v5973_v38  ;;  %v1802_v21 = vpop.f32.mrb[3].mxu0  ;;  %v4589_v60 = vadd.f32 %v2026_v56, %v5976_v62  ;;  %v2028_v4 = vpop.f32.mrb[3].mxu1  ;;  %v2553_v5 = vmax.f32 %v4555_v43, 0.0  ;;  %v2555_v7 = vmax.f32 %v4587_v45, 0.0 }
 0x160   : > { %v4558_v1 = vadd.f32 %v1802_v21, %v5979_v40  ;;  %v4590_v6 = vadd.f32 %v2028_v4, %v5982_v41  ;;  %v2554_v10 = vmax.f32 %v4556_v50, 0.0  ;;  %v2556_v48 = vmax.f32 %v4588_v55, 0.0  ;;  %v4862_v21 = vld [vmem:[%s6342_s3 + $0x190] sm:$0xff]  }
 0x161   : > { %v2561_v22 = vmax.f32 %v4557_v14, 0.0  ;;  %v2563_v24 = vmax.f32 %v4589_v60, 0.0  ;;  %v4863_v60 = vld [vmem:[%s6342_s3 + $0x158] sm:$0xff]  }
 0x162   : > { %v2562_v46 = vmax.f32 %v4558_v1, 0.0  ;;  %v2564_v59 = vmax.f32 %v4590_v6, 0.0  ;;  %v4865_v6 = vld [vmem:[%s6342_s3 + $0x1d8] sm:$0xff]  }
 0x163   : > { %v2681_v57 = vpack.c.bf16 %v2561_v22, %v2553_v5  ;;  %v2683_v2 = vpack.c.bf16 %v2563_v24, %v2555_v7 }
 0x164   : > { %v2682_v3 = vpack.c.bf16 %v2562_v46, %v2554_v10  ;;  %v1806_v8 = vpop.f32.mrb[4].mxu0  ;;  %v2684_v19 = vpack.c.bf16 %v2564_v59, %v2556_v48  ;;  %v2032_v11 = vpop.f32.mrb[4].mxu1 }
 0x165   : > { %v4559_v31 = vadd.f32 %v1806_v8, %v5973_v38  ;;  %v1808_v13 = vpop.f32.mrb[5].mxu0  ;;  %v4591_v47 = vadd.f32 %v2032_v11, %v5976_v62  ;;  %v2034_v36 = vpop.f32.mrb[5].mxu1 }
 0x166   : > { %v4560_v53 = vadd.f32 %v1808_v13, %v5979_v40  ;;  %v1810_v18 = vpop.f32.mrb[6].mxu0  ;;  %3296 = vmatprep.mubr.bf16.mxu0 %v2682_v3  ;;  %v4592_v39 = vadd.f32 %v2034_v36, %v5982_v41  ;;  %v2036_v27 = vpop.f32.mrb[6].mxu1  ;;  %3393 = vmatprep.mubr.bf16.mxu1 %v2684_v19  ;;  %v4866_v19 = vld [vmem:[%s6342_s3 + $0x198] sm:$0xff]  }
 0x167   : > { %v4561_v23 = vadd.f32 %v1810_v18, %v5973_v38  ;;  %v1812_v12 = vpop.f32.mrb[7].mxu0  ;;  %3297 = vmatmul.mubr.bf16.vlgmr.msra.gmra.mrb[64].mxu0 %v2681_v57  ;;  %v4593_v25 = vadd.f32 %v2036_v27, %v5976_v62  ;;  %v2038_v30 = vpop.f32.mrb[7].mxu1  ;;  %3394 = vmatmul.mubr.bf16.vlgmr.msra.gmra.mrb[64].mxu1 %v2683_v2  ;;  %v2569_v33 = vmax.f32 %v4559_v31, 0.0  ;;  %v2571_v15 = vmax.f32 %v4591_v47, 0.0  ;;  %v4864_v2 = vld [vmem:[%s6342_s3 + $0x118] sm:$0xff]   ;;  %v4867_v31 = vld [vmem:[%s6342_s3 + $0x160] sm:$0xff]  }
 0x168   : > { %v4562_v29 = vadd.f32 %v1812_v12, %v5979_v40  ;;  %4364 = vmatpush3.bf16.msra.mxu0 %v4852_v9  ;;  %v4594_v58 = vadd.f32 %v2038_v30, %v5982_v41  ;;  %4428 = vmatpush3.bf16.msra.mxu1 %v4854_v16  ;;  %v2570_v49 = vmax.f32 %v4560_v53, 0.0  ;;  %v2572_v61 = vmax.f32 %v4592_v39, 0.0  ;;  %v4869_v47 = vld [vmem:[%s6342_s3 + $0x1e0] sm:$0xff]  }
 0x169   : > { %v2577_v34 = vmax.f32 %v4561_v23, 0.0  ;;  %4365 = vmatprep.subr.bf16.mxu0 %v4855_v17  ;;  %v2579_v26 = vmax.f32 %v4593_v25, 0.0  ;;  %4429 = vmatprep.subr.bf16.mxu1 %v4857_v20  ;;  %v4868_v27 = vld [vmem:[%s6342_s3 + $0x120] sm:$0xff]  }
 0x16a   : > { %v2578_v35 = vmax.f32 %v4562_v29, 0.0  ;;  %v2580_v44 = vmax.f32 %v4594_v58, 0.0 }
 0x16b   : > { %v2689_v43 = vpack.c.bf16 %v2577_v34, %v2569_v33  ;;  %v2691_v0 = vpack.c.bf16 %v2579_v26, %v2571_v15  ;;  %v4871_v33 = vld [vmem:[%s6342_s3 + $0x168] sm:$0xff]  }
 0x16c   : > { %v2690_v45 = vpack.c.bf16 %v2578_v35, %v2570_v49  ;;  %v1816_v50 = vpop.f32.mrb[8].mxu0  ;;  %4366 = vmatpush3.bf16.msra.mxu0 %v4856_v32  ;;  %v2692_v52 = vpack.c.bf16 %v2580_v44, %v2572_v61  ;;  %v2042_v14 = vpop.f32.mrb[8].mxu1  ;;  %4430 = vmatpush3.bf16.msra.mxu1 %v4858_v42  ;;  %v4870_v32 = vld [vmem:[%s6342_s3 + $0x1a0] sm:$0xff]   ;;  %v4873_v15 = vld [vmem:[%s6342_s3 + $0x1e8] sm:$0xff]  }
 0x16d   : > { %v4563_v55 = vadd.f32 %v1816_v50, %v5973_v38  ;;  %v1818_v56 = vpop.f32.mrb[9].mxu0  ;;  %4367 = vmatprep.subr.bf16.mxu0 %v4859_v54  ;;  %v4595_v1 = vadd.f32 %v2042_v14, %v5976_v62  ;;  %v2044_v5 = vpop.f32.mrb[9].mxu1  ;;  %4431 = vmatprep.subr.bf16.mxu1 %v4861_v37 }
 0x16e   : > { %v4564_v4 = vadd.f32 %v1818_v56, %v5979_v40  ;;  %v1820_v22 = vpop.f32.mrb[10].mxu0  ;;  %3304 = vmatprep.mubr.bf16.mxu0 %v2690_v45  ;;  %v4596_v7 = vadd.f32 %v2044_v5, %v5982_v41  ;;  %v2046_v24 = vpop.f32.mrb[10].mxu1  ;;  %3401 = vmatprep.mubr.bf16.mxu1 %v2692_v52  ;;  %v4874_v52 = vld [vmem:[%s6342_s3 + $0x1a8] sm:$0xff]  }
 0x16f   : > { %v4565_v10 = vadd.f32 %v1820_v22, %v5973_v38  ;;  %v1822_v46 = vpop.f32.mrb[11].mxu0  ;;  %3305 = vmatmul.mubr.bf16.gmra.mrb[68].mxu0 %v2689_v43  ;;  %v4597_v48 = vadd.f32 %v2046_v24, %v5976_v62  ;;  %v2048_v59 = vpop.f32.mrb[11].mxu1  ;;  %3402 = vmatmul.mubr.bf16.gmra.mrb[68].mxu1 %v2691_v0  ;;  %v2585_v3 = vmax.f32 %v4563_v55, 0.0  ;;  %v2587_v11 = vmax.f32 %v4595_v1, 0.0  ;;  %v4872_v0 = vld [vmem:[%s6342_s3 + $0x128] sm:$0xff]   ;;  %v4875_v55 = vld [vmem:[%s6342_s3 + $0x170] sm:$0xff]  }
 0x170   : > { %v4566_v57 = vadd.f32 %v1822_v46, %v5979_v40  ;;  %4368 = vmatpush3.bf16.msra.mxu0 %v4860_v51  ;;  %v4598_v9 = vadd.f32 %v2048_v59, %v5982_v41  ;;  %4432 = vmatpush3.bf16.msra.mxu1 %v4862_v21  ;;  %v2586_v13 = vmax.f32 %v4564_v4, 0.0  ;;  %v2588_v53 = vmax.f32 %v4596_v7, 0.0  ;;  %v4877_v1 = vld [vmem:[%s6342_s3 + $0x1f0] sm:$0xff]  }
 0x171   : > { %v2593_v8 = vmax.f32 %v4565_v10, 0.0  ;;  %4369 = vmatprep.subr.bf16.mxu0 %v4863_v60  ;;  %v2595_v16 = vmax.f32 %v4597_v48, 0.0  ;;  %4433 = vmatprep.subr.bf16.mxu1 %v4865_v6  ;;  %v4876_v24 = vld [vmem:[%s6342_s3 + $0x130] sm:$0xff]  }
 0x172   : > { %v2594_v17 = vmax.f32 %v4566_v57, 0.0  ;;  %v2596_v18 = vmax.f32 %v4598_v9, 0.0 }
 0x173   : > { %v2697_v36 = vpack.c.bf16 %v2593_v8, %v2585_v3  ;;  %v2699_v20 = vpack.c.bf16 %v2595_v16, %v2587_v11  ;;  %v4879_v3 = vld [vmem:[%s6342_s3 + $0x178] sm:$0xff]  }
 0x174   : > { %v2698_v39 = vpack.c.bf16 %v2594_v17, %v2586_v13  ;;  %v1826_v23 = vpop.f32.mrb[12].mxu0  ;;  %4370 = vmatpush3.bf16.msra.mxu0 %v4864_v2  ;;  %v2700_v12 = vpack.c.bf16 %v2596_v18, %v2588_v53  ;;  %v2052_v29 = vpop.f32.mrb[12].mxu1  ;;  %4434 = vmatpush3.bf16.msra.mxu1 %v4866_v19  ;;  %v4878_v2 = vld [vmem:[%s6342_s3 + $0x1b0] sm:$0xff]   ;;  %v4881_v11 = vld [vmem:[%s6342_s3 + $0x1f8] sm:$0xff]  }
 0x175   : > { %v4567_v25 = vadd.f32 %v1826_v23, %v5973_v38  ;;  %v1828_v30 = vpop.f32.mrb[13].mxu0  ;;  %4371 = vmatprep.subr.bf16.mxu0 %v4867_v31  ;;  %v4599_v34 = vadd.f32 %v2052_v29, %v5976_v62  ;;  %v2054_v42 = vpop.f32.mrb[13].mxu1  ;;  %4435 = vmatprep.subr.bf16.mxu1 %v4869_v47 }
 0x176   : > { %v4568_v58 = vadd.f32 %v1828_v30, %v5979_v40  ;;  %v1830_v54 = vpop.f32.mrb[14].mxu0  ;;  %3312 = vmatprep.mubr.bf16.mxu0 %v2698_v39  ;;  %v4600_v49 = vadd.f32 %v2054_v42, %v5982_v41  ;;  %v2056_v35 = vpop.f32.mrb[14].mxu1  ;;  %3409 = vmatprep.mubr.bf16.mxu1 %v2700_v12  ;;  %v4882_v12 = vld [vmem:[%s6342_s3 + $0x1b8] sm:$0xff]  }
 0x177   : > { %v4569_v26 = vadd.f32 %v1830_v54, %v5973_v38  ;;  %v1832_v37 = vpop.f32.mrb[15].mxu0  ;;  %3313 = vmatmul.mubr.bf16.gmra.mrb[72].mxu0 %v2697_v36  ;;  %v4601_v61 = vadd.f32 %v2056_v35, %v5976_v62  ;;  %v2058_v44 = vpop.f32.mrb[15].mxu1  ;;  %3410 = vmatmul.mubr.bf16.gmra.mrb[72].mxu1 %v2699_v20  ;;  %v2601_v45 = vmax.f32 %v4567_v25, 0.0  ;;  %v2603_v14 = vmax.f32 %v4599_v34, 0.0  ;;  %v4880_v20 = vld [vmem:[%s6342_s3 + $0x138] sm:$0xff]  }
 0x178   : > { %v4570_v43 = vadd.f32 %v1832_v37, %v5979_v40  ;;  %4372 = vmatpush3.bf16.msra.mxu0 %v4868_v27  ;;  %v4602_v51 = vadd.f32 %v2058_v44, %v5982_v41  ;;  %4436 = vmatpush3.bf16.msra.mxu1 %v4870_v32  ;;  %v2602_v56 = vmax.f32 %v4568_v58, 0.0  ;;  %v2604_v4 = vmax.f32 %v4600_v49, 0.0 }
 0x179   : > { %v2609_v50 = vmax.f32 %v4569_v26, 0.0  ;;  %4373 = vmatprep.subr.bf16.mxu0 %v4871_v33  ;;  %v2611_v21 = vmax.f32 %v4601_v61, 0.0  ;;  %4437 = vmatprep.subr.bf16.mxu1 %v4873_v15 }
 0x17a   : > { %v2610_v60 = vmax.f32 %v4570_v43, 0.0  ;;  %v2612_v22 = vmax.f32 %v4602_v51, 0.0 }
 0x17b   : > { %v2705_v5 = vpack.c.bf16 %v2609_v50, %v2601_v45  ;;  %v2707_v6 = vpack.c.bf16 %v2611_v21, %v2603_v14 }
 0x17c   : > { %v2706_v7 = vpack.c.bf16 %v2610_v60, %v2602_v56  ;;  %v1836_v10 = vpop.f32.mrb[16].mxu0  ;;  %4374 = vmatpush3.bf16.msra.mxu0 %v4872_v0  ;;  %v2708_v46 = vpack.c.bf16 %v2612_v22, %v2604_v4  ;;  %v2062_v57 = vpop.f32.mrb[16].mxu1  ;;  %4438 = vmatpush3.bf16.msra.mxu1 %v4874_v52 }
 0x17d   : > { %v4571_v48 = vadd.f32 %v1836_v10, %v5973_v38  ;;  %v1838_v59 = vpop.f32.mrb[17].mxu0  ;;  %4375 = vmatprep.subr.bf16.mxu0 %v4875_v55  ;;  %v4603_v8 = vadd.f32 %v2062_v57, %v5976_v62  ;;  %v2064_v19 = vpop.f32.mrb[17].mxu1  ;;  %4439 = vmatprep.subr.bf16.mxu1 %v4877_v1 }
 0x17e   : > { %v4572_v9 = vadd.f32 %v1838_v59, %v5979_v40  ;;  %v1840_v31 = vpop.f32.mrb[18].mxu0  ;;  %3320 = vmatprep.mubr.bf16.mxu0 %v2706_v7  ;;  %v4604_v13 = vadd.f32 %v2064_v19, %v5982_v41  ;;  %v2066_v17 = vpop.f32.mrb[18].mxu1  ;;  %3417 = vmatprep.mubr.bf16.mxu1 %v2708_v46 }
 0x17f   : > { %v4573_v16 = vadd.f32 %v1840_v31, %v5973_v38  ;;  %v1842_v47 = vpop.f32.mrb[19].mxu0  ;;  %3321 = vmatmul.mubr.bf16.gmra.mrb[76].mxu0 %v2705_v5  ;;  %v4605_v53 = vadd.f32 %v2066_v17, %v5976_v62  ;;  %v2068_v18 = vpop.f32.mrb[19].mxu1  ;;  %3418 = vmatmul.mubr.bf16.gmra.mrb[76].mxu1 %v2707_v6  ;;  %v2617_v39 = vmax.f32 %v4571_v48, 0.0  ;;  %v2619_v25 = vmax.f32 %v4603_v8, 0.0 }
 0x180   : > { %v4574_v36 = vadd.f32 %v1842_v47, %v5979_v40  ;;  %4376 = vmatpush3.bf16.msra.mxu0 %v4876_v24  ;;  %v4606_v27 = vadd.f32 %v2068_v18, %v5982_v41  ;;  %4440 = vmatpush3.bf16.msra.mxu1 %v4878_v2  ;;  %v2618_v29 = vmax.f32 %v4572_v9, 0.0  ;;  %v2620_v33 = vmax.f32 %v4604_v13, 0.0 }
 0x181   : > { %v2625_v23 = vmax.f32 %v4573_v16, 0.0  ;;  %4377 = vmatprep.subr.bf16.mxu0 %v4879_v3  ;;  %v2627_v30 = vmax.f32 %v4605_v53, 0.0  ;;  %4441 = vmatprep.subr.bf16.mxu1 %v4881_v11 }
 0x182   : > { %v2626_v32 = vmax.f32 %v4574_v36, 0.0  ;;  %v2628_v58 = vmax.f32 %v4606_v27, 0.0 }
 0x183   : > { %v2713_v34 = vpack.c.bf16 %v2625_v23, %v2617_v39  ;;  %v2715_v42 = vpack.c.bf16 %v2627_v30, %v2619_v25 }
 0x184   : > { %v2714_v54 = vpack.c.bf16 %v2626_v32, %v2618_v29  ;;  %v1846_v15 = vpop.f32.mrb[20].mxu0  ;;  %4378 = vmatpush3.bf16.msra.mxu0 %v4880_v20  ;;  %v2716_v49 = vpack.c.bf16 %v2628_v58, %v2620_v33  ;;  %v2072_v35 = vpop.f32.mrb[20].mxu1  ;;  %4442 = vmatpush3.bf16.msra.mxu1 %v4882_v12 }
 0x185   : > { %v4575_v26 = vadd.f32 %v1846_v15, %v5973_v38  ;;  %v1848_v37 = vpop.f32.mrb[21].mxu0  ;;  %v4607_v61 = vadd.f32 %v2072_v35, %v5976_v62  ;;  %v2074_v44 = vpop.f32.mrb[21].mxu1 }
 0x186   : > { %v4576_v43 = vadd.f32 %v1848_v37, %v5979_v40  ;;  %v1850_v0 = vpop.f32.mrb[22].mxu0  ;;  %3328 = vmatprep.mubr.bf16.mxu0 %v2714_v54  ;;  %v4608_v45 = vadd.f32 %v2074_v44, %v5982_v41  ;;  %v2076_v51 = vpop.f32.mrb[22].mxu1  ;;  %3425 = vmatprep.mubr.bf16.mxu1 %v2716_v49 }
 0x187   : > { %v4577_v50 = vadd.f32 %v1850_v0, %v5973_v38  ;;  %v1852_v52 = vpop.f32.mrb[23].mxu0  ;;  %3329 = vmatmul.mubr.bf16.gmra.mrb[80].mxu0 %v2713_v34  ;;  %v4609_v55 = vadd.f32 %v2076_v51, %v5976_v62  ;;  %v2078_v56 = vpop.f32.mrb[23].mxu1  ;;  %3426 = vmatmul.mubr.bf16.gmra.mrb[80].mxu1 %v2715_v42  ;;  %v2633_v21 = vmax.f32 %v4575_v26, 0.0  ;;  %v2635_v4 = vmax.f32 %v4607_v61, 0.0 }
 0x188   : > { %v4578_v14 = vadd.f32 %v1852_v52, %v5979_v40  ;;  %v4610_v1 = vadd.f32 %v2078_v56, %v5982_v41  ;;  %v2634_v5 = vmax.f32 %v4576_v43, 0.0  ;;  %v2636_v7 = vmax.f32 %v4608_v45, 0.0 }
 0x189   : > { %v2641_v60 = vmax.f32 %v4577_v50, 0.0  ;;  %v2643_v22 = vmax.f32 %v4609_v55, 0.0 }
 0x18a   : > { %v2642_v6 = vmax.f32 %v4578_v14, 0.0  ;;  %v2644_v24 = vmax.f32 %v4610_v1, 0.0 }
 0x18b   : > { %v2721_v10 = vpack.c.bf16 %v2641_v60, %v2633_v21  ;;  %v2723_v46 = vpack.c.bf16 %v2643_v22, %v2635_v4 }
 0x18c   : > { %v2722_v48 = vpack.c.bf16 %v2642_v6, %v2634_v5  ;;  %v1856_v57 = vpop.f32.mrb[24].mxu0  ;;  %v2724_v59 = vpack.c.bf16 %v2644_v24, %v2636_v7  ;;  %v2082_v3 = vpop.f32.mrb[24].mxu1 }
 0x18d   : > { %v4579_v2 = vadd.f32 %v1856_v57, %v5973_v38  ;;  %v1858_v8 = vpop.f32.mrb[25].mxu0  ;;  %v4611_v9 = vadd.f32 %v2082_v3, %v5976_v62  ;;  %v2084_v31 = vpop.f32.mrb[25].mxu1 }
 0x18e   : > { %v4580_v19 = vadd.f32 %v1858_v8, %v5979_v40  ;;  %v1860_v11 = vpop.f32.mrb[26].mxu0  ;;  %3336 = vmatprep.mubr.bf16.mxu0 %v2722_v48  ;;  %v4612_v13 = vadd.f32 %v2084_v31, %v5982_v41  ;;  %v2086_v17 = vpop.f32.mrb[26].mxu1  ;;  %3433 = vmatprep.mubr.bf16.mxu1 %v2724_v59 }
 0x18f   : > { %v4581_v16 = vadd.f32 %v1860_v11, %v5973_v38  ;;  %v1862_v47 = vpop.f32.mrb[27].mxu0  ;;  %3337 = vmatmul.mubr.bf16.gmra.mrb[84].mxu0 %v2721_v10  ;;  %v4613_v53 = vadd.f32 %v2086_v17, %v5976_v62  ;;  %v2088_v18 = vpop.f32.mrb[27].mxu1  ;;  %3434 = vmatmul.mubr.bf16.gmra.mrb[84].mxu1 %v2723_v46  ;;  %v2649_v20 = vmax.f32 %v4579_v2, 0.0  ;;  %v2651_v27 = vmax.f32 %v4611_v9, 0.0 }
 0x190   : > { %v4582_v36 = vadd.f32 %v1862_v47, %v5979_v40  ;;  %v4614_v23 = vadd.f32 %v2088_v18, %v5982_v41  ;;  %v2650_v12 = vmax.f32 %v4580_v19, 0.0  ;;  %v2652_v30 = vmax.f32 %v4612_v13, 0.0 }
 0x191   : > { %v2657_v39 = vmax.f32 %v4581_v16, 0.0  ;;  %v2659_v25 = vmax.f32 %v4613_v53, 0.0  ;;  %v614_v46 = vsub.s32 7, %v5961_v28 }
 0x192   : > { %v2658_v29 = vmax.f32 %v4582_v36, 0.0  ;;  %v2660_v33 = vmax.f32 %v4614_v23, 0.0 }
 0x193   : > { %v2729_v32 = vpack.c.bf16 %v2657_v39, %v2649_v20  ;;  %v2731_v34 = vpack.c.bf16 %v2659_v25, %v2651_v27  ;;  %v6152_v2 = vrot.slane %v5967_v63, %v614_v46 }
 0x194   : > { %v2730_v58 = vpack.c.bf16 %v2658_v29, %v2650_v12  ;;  %v1866_v42 = vpop.f32.mrb[28].mxu0  ;;  %v2732_v54 = vpack.c.bf16 %v2660_v33, %v2652_v30  ;;  %v2092_v49 = vpop.f32.mrb[28].mxu1 }
 0x195   : > { %v4583_v15 = vadd.f32 %v1866_v42, %v5973_v38  ;;  %v1868_v26 = vpop.f32.mrb[29].mxu0  ;;  %v4615_v35 = vadd.f32 %v2092_v49, %v5976_v62  ;;  %v2094_v61 = vpop.f32.mrb[29].mxu1 }
 0x196   : > { %v4584_v37 = vadd.f32 %v1868_v26, %v5979_v40  ;;  %v1870_v43 = vpop.f32.mrb[30].mxu0  ;;  %3344 = vmatprep.mubr.bf16.mxu0 %v2730_v58  ;;  %v4616_v44 = vadd.f32 %v2094_v61, %v5982_v41  ;;  %v2096_v45 = vpop.f32.mrb[30].mxu1  ;;  %3441 = vmatprep.mubr.bf16.mxu1 %v2732_v54 }
 0x197   : > { %v4585_v0 = vadd.f32 %v1870_v43, %v5973_v38  ;;  %v1872_v50 = vpop.f32.mrb[31].mxu0  ;;  %3345 = vmatmul.mubr.bf16.gmra.mrb[88].mxu0 %v2729_v32  ;;  %v4617_v51 = vadd.f32 %v2096_v45, %v5976_v62  ;;  %v2098_v55 = vpop.f32.mrb[31].mxu1  ;;  %3442 = vmatmul.mubr.bf16.gmra.mrb[88].mxu1 %v2731_v34  ;;  %v2665_v14 = vmax.f32 %v4583_v15, 0.0  ;;  %v2667_v60 = vmax.f32 %v4615_v35, 0.0 }
 0x198   : > { %v4586_v52 = vadd.f32 %v1872_v50, %v5979_v40  ;;  %v4618_v21 = vadd.f32 %v2098_v55, %v5982_v41  ;;  %v2666_v1 = vmax.f32 %v4584_v37, 0.0  ;;  %v2668_v22 = vmax.f32 %v4616_v44, 0.0 }
 0x199   : > { %v2673_v56 = vmax.f32 %v4585_v0, 0.0  ;;  %v2675_v4 = vmax.f32 %v4617_v51, 0.0  ;;  %v602_v62 = vsub.s32 4, %v5961_v28  ;;  %v610_v40 = vsub.s32 6, %v5961_v28 }
 0x19a   : > { %v2674_v5 = vmax.f32 %v4586_v52, 0.0  ;;  %v2676_v6 = vmax.f32 %v4618_v21, 0.0  ;;  %v606_v41 = vsub.s32 5, %v5961_v28 }
 0x19b   : > { %v2737_v38 = vpack.c.bf16 %v2673_v56, %v2665_v14  ;;  %v2739_v7 = vpack.c.bf16 %v2675_v4, %v2667_v60  ;;  %v6143_v48 = vrot.slane %v5967_v63, %v602_v62  ;;  %v6146_v57 = vrot.slane %v5967_v63, %v610_v40 }
 0x19c   : > { %v2738_v10 = vpack.c.bf16 %v2674_v5, %v2666_v1  ;;  %v2740_v24 = vpack.c.bf16 %v2676_v6, %v2668_v22  ;;  %v6149_v59 = vrot.slane %v5967_v63, %v606_v41 }
 0x19e   : > { %3352 = vmatprep.mubr.bf16.mxu0 %v2738_v10  ;;  %3449 = vmatprep.mubr.bf16.mxu1 %v2740_v24 }
 0x19f   : > { %3353 = vmatmul.mubr.bf16.gmra.mrb[92].mxu0 %v2737_v38  ;;  %3450 = vmatmul.mubr.bf16.gmra.mrb[92].mxu1 %v2739_v7 }
 0x1dc   : > { %v2248_v3 = vpop.f32.mrb[32].mxu0  ;;  %v2474_v9 = vpop.f32.mrb[32].mxu1 }
 0x1dd   : > { %v4619_v8 = vadd.f32 %v2248_v3, %v6143_v48  ;;  %v2250_v19 = vpop.f32.mrb[33].mxu0  ;;  %v4651_v31 = vadd.f32 %v2474_v9, %v6146_v57  ;;  %v2476_v11 = vpop.f32.mrb[33].mxu1 }
 0x1de   : > { %v4620_v28 = vadd.f32 %v2250_v19, %v6149_v59  ;;  %v2252_v13 = vpop.f32.mrb[34].mxu0  ;;  %v4652_v16 = vadd.f32 %v2476_v11, %v6152_v2  ;;  %v2478_v47 = vpop.f32.mrb[34].mxu1 }
 0x1df   : > { %v4621_v17 = vadd.f32 %v2252_v13, %v6143_v48  ;;  %v2254_v53 = vpop.f32.mrb[35].mxu0  ;;  %v4653_v63 = vadd.f32 %v2478_v47, %v6146_v57  ;;  %v2480_v18 = vpop.f32.mrb[35].mxu1  ;;  %v2557_v20 = vmax.f32 %v4619_v8, 0.0  ;;  %v2559_v27 = vmax.f32 %v4651_v31, 0.0 }
 0x1e0   : > { %v4622_v36 = vadd.f32 %v2254_v53, %v6149_v59  ;;  %v4654_v23 = vadd.f32 %v2480_v18, %v6152_v2  ;;  %v2558_v12 = vmax.f32 %v4620_v28, 0.0  ;;  %v2560_v30 = vmax.f32 %v4652_v16, 0.0 }
 0x1e1   : > { %v2565_v39 = vmax.f32 %v4621_v17, 0.0  ;;  %v2567_v25 = vmax.f32 %v4653_v63, 0.0 }
 0x1e2   : > { %v2566_v29 = vmax.f32 %v4622_v36, 0.0  ;;  %v2568_v33 = vmax.f32 %v4654_v23, 0.0 }
 0x1e3   : > { %v2685_v32 = vpack.c.bf16 %v2565_v39, %v2557_v20  ;;  %v2687_v34 = vpack.c.bf16 %v2567_v25, %v2559_v27 }
 0x1e4   : > { %v2686_v58 = vpack.c.bf16 %v2566_v29, %v2558_v12  ;;  %v2258_v42 = vpop.f32.mrb[36].mxu0  ;;  %v2688_v54 = vpack.c.bf16 %v2568_v33, %v2560_v30  ;;  %v2484_v49 = vpop.f32.mrb[36].mxu1 }
 0x1e5   : > { %v4623_v15 = vadd.f32 %v2258_v42, %v6143_v48  ;;  %v2260_v26 = vpop.f32.mrb[37].mxu0  ;;  %v4655_v35 = vadd.f32 %v2484_v49, %v6146_v57  ;;  %v2486_v61 = vpop.f32.mrb[37].mxu1 }
 0x1e6   : > { %v4624_v37 = vadd.f32 %v2260_v26, %v6149_v59  ;;  %v2262_v43 = vpop.f32.mrb[38].mxu0  ;;  %3490 = vmatprep.mubr.bf16.mxu0 %v2686_v58  ;;  %v4656_v44 = vadd.f32 %v2486_v61, %v6152_v2  ;;  %v2488_v45 = vpop.f32.mrb[38].mxu1  ;;  %3587 = vmatprep.mubr.bf16.mxu1 %v2688_v54 }
 0x1e7   : > { %v4625_v0 = vadd.f32 %v2262_v43, %v6143_v48  ;;  %v2264_v50 = vpop.f32.mrb[39].mxu0  ;;  %3491 = vmatmul.mubr.bf16.vlgmr.msra.gmra.mrb[96].mxu0 %v2685_v32  ;;  %v4657_v51 = vadd.f32 %v2488_v45, %v6146_v57  ;;  %v2490_v55 = vpop.f32.mrb[39].mxu1  ;;  %3588 = vmatmul.mubr.bf16.vlgmr.msra.gmra.mrb[96].mxu1 %v2687_v34  ;;  %v2573_v14 = vmax.f32 %v4623_v15, 0.0  ;;  %v2575_v60 = vmax.f32 %v4655_v35, 0.0 }
 0x1e8   : > { %v4626_v52 = vadd.f32 %v2264_v50, %v6149_v59  ;;  %v4658_v21 = vadd.f32 %v2490_v55, %v6152_v2  ;;  %v2574_v1 = vmax.f32 %v4624_v37, 0.0  ;;  %v2576_v22 = vmax.f32 %v4656_v44, 0.0 }
 0x1e9   : > { %v2581_v56 = vmax.f32 %v4625_v0, 0.0  ;;  %v2583_v4 = vmax.f32 %v4657_v51, 0.0 }
 0x1ea   : > { %v2582_v5 = vmax.f32 %v4626_v52, 0.0  ;;  %v2584_v6 = vmax.f32 %v4658_v21, 0.0 }
 0x1eb   : > { %v2693_v38 = vpack.c.bf16 %v2581_v56, %v2573_v14  ;;  %v2695_v7 = vpack.c.bf16 %v2583_v4, %v2575_v60  ;;  %v4883_v60 = vld [vmem:[%s6344_s5] sm:$0xff]  }
 0x1ec   : > { %v2694_v10 = vpack.c.bf16 %v2582_v5, %v2574_v1  ;;  %v2268_v24 = vpop.f32.mrb[40].mxu0  ;;  %v2696_v62 = vpack.c.bf16 %v2584_v6, %v2576_v22  ;;  %v2494_v41 = vpop.f32.mrb[40].mxu1  ;;  %v4884_v1 = vld [vmem:[%s6344_s5 + $0x8] sm:$0xff]   ;;  %4507 = vmatprep.subr.bf16.mxu0 %v4883_v60  ;;  %4539 = vmatprep.subr.bf16.mxu1 %v4883_v60 }
 0x1ed   : > { %v4627_v40 = vadd.f32 %v2268_v24, %v6143_v48  ;;  %v2270_v46 = vpop.f32.mrb[41].mxu0  ;;  %v4659_v3 = vadd.f32 %v2494_v41, %v6146_v57  ;;  %v2496_v9 = vpop.f32.mrb[41].mxu1  ;;  %4508 = vmatpush3.bf16.msra.mxu0 %v4883_v60  ;;  %4547 = vmatpush3.bf16.msra.mxu1 %v4883_v60 }
 0x1ee   : > { %v4628_v8 = vadd.f32 %v2270_v46, %v6149_v59  ;;  %v2272_v19 = vpop.f32.mrb[42].mxu0  ;;  %3498 = vmatprep.mubr.bf16.mxu0 %v2694_v10  ;;  %v4660_v31 = vadd.f32 %v2496_v9, %v6152_v2  ;;  %v2498_v11 = vpop.f32.mrb[42].mxu1  ;;  %3595 = vmatprep.mubr.bf16.mxu1 %v2696_v62  ;;  %v4885_v9 = vld [vmem:[%s6344_s5 + $0x10] sm:$0xff]  }
 0x1ef   : > { %v4629_v28 = vadd.f32 %v2272_v19, %v6143_v48  ;;  %v2274_v13 = vpop.f32.mrb[43].mxu0  ;;  %3499 = vmatmul.mubr.bf16.gmra.mrb[100].mxu0 %v2693_v38  ;;  %v4661_v16 = vadd.f32 %v2498_v11, %v6146_v57  ;;  %v2500_v47 = vpop.f32.mrb[43].mxu1  ;;  %3596 = vmatmul.mubr.bf16.gmra.mrb[100].mxu1 %v2695_v7  ;;  %v2589_v53 = vmax.f32 %v4627_v40, 0.0  ;;  %v2591_v18 = vmax.f32 %v4659_v3, 0.0 }
 0x1f0   : > { %v4630_v17 = vadd.f32 %v2274_v13, %v6149_v59  ;;  %v4662_v36 = vadd.f32 %v2500_v47, %v6152_v2  ;;  %v2590_v20 = vmax.f32 %v4628_v8, 0.0  ;;  %v2592_v27 = vmax.f32 %v4660_v31, 0.0  ;;  %4509 = vmatprep.subr.bf16.mxu0 %v4884_v1  ;;  %4540 = vmatprep.subr.bf16.mxu1 %v4884_v1 }
 0x1f1   : > { %v2597_v63 = vmax.f32 %v4629_v28, 0.0  ;;  %v2599_v39 = vmax.f32 %v4661_v16, 0.0  ;;  %4510 = vmatpush3.bf16.msra.mxu0 %v4884_v1  ;;  %4548 = vmatpush3.bf16.msra.mxu1 %v4884_v1 }
 0x1f2   : > { %v2598_v23 = vmax.f32 %v4630_v17, 0.0  ;;  %v2600_v25 = vmax.f32 %v4662_v36, 0.0  ;;  %4511 = vmatprep.subr.bf16.mxu0 %v4885_v9  ;;  %4541 = vmatprep.subr.bf16.mxu1 %v4885_v9 }
 0x1f3   : > { %v2701_v12 = vpack.c.bf16 %v2597_v63, %v2589_v53  ;;  %v2703_v29 = vpack.c.bf16 %v2599_v39, %v2591_v18 }
 0x1f4   : > { %v2702_v30 = vpack.c.bf16 %v2598_v23, %v2590_v20  ;;  %v2278_v32 = vpop.f32.mrb[44].mxu0  ;;  %v2704_v33 = vpack.c.bf16 %v2600_v25, %v2592_v27  ;;  %v2504_v58 = vpop.f32.mrb[44].mxu1 }
 0x1f5   : > { %v4631_v34 = vadd.f32 %v2278_v32, %v6143_v48  ;;  %v2280_v42 = vpop.f32.mrb[45].mxu0  ;;  %v4663_v54 = vadd.f32 %v2504_v58, %v6146_v57  ;;  %v2506_v49 = vpop.f32.mrb[45].mxu1  ;;  %4512 = vmatpush3.bf16.msra.mxu0 %v4885_v9  ;;  %4549 = vmatpush3.bf16.msra.mxu1 %v4885_v9 }
 0x1f6   : > { %v4632_v15 = vadd.f32 %v2280_v42, %v6149_v59  ;;  %v2282_v26 = vpop.f32.mrb[46].mxu0  ;;  %3506 = vmatprep.mubr.bf16.mxu0 %v2702_v30  ;;  %v4664_v35 = vadd.f32 %v2506_v49, %v6152_v2  ;;  %v2508_v61 = vpop.f32.mrb[46].mxu1  ;;  %3603 = vmatprep.mubr.bf16.mxu1 %v2704_v33 }
 0x1f7   : > { %v4633_v37 = vadd.f32 %v2282_v26, %v6143_v48  ;;  %v2284_v43 = vpop.f32.mrb[47].mxu0  ;;  %3507 = vmatmul.mubr.bf16.gmra.mrb[104].mxu0 %v2701_v12  ;;  %v4665_v44 = vadd.f32 %v2508_v61, %v6146_v57  ;;  %v2510_v45 = vpop.f32.mrb[47].mxu1  ;;  %3604 = vmatmul.mubr.bf16.gmra.mrb[104].mxu1 %v2703_v29  ;;  %v2605_v50 = vmax.f32 %v4631_v34, 0.0  ;;  %v2607_v55 = vmax.f32 %v4663_v54, 0.0 }
 0x1f8   : > { %v4634_v0 = vadd.f32 %v2284_v43, %v6149_v59  ;;  %v4666_v52 = vadd.f32 %v2510_v45, %v6152_v2  ;;  %v2606_v14 = vmax.f32 %v4632_v15, 0.0  ;;  %v2608_v4 = vmax.f32 %v4664_v35, 0.0 }
 0x1f9   : > { %v2613_v51 = vmax.f32 %v4633_v37, 0.0  ;;  %v2615_v56 = vmax.f32 %v4665_v44, 0.0 }
 0x1fa   : > { %v2614_v21 = vmax.f32 %v4634_v0, 0.0  ;;  %v2616_v22 = vmax.f32 %v4666_v52, 0.0 }
 0x1fb   : > { %v2709_v5 = vpack.c.bf16 %v2613_v51, %v2605_v50  ;;  %v2711_v38 = vpack.c.bf16 %v2615_v56, %v2607_v55 }
 0x1fc   : > { %v2710_v6 = vpack.c.bf16 %v2614_v21, %v2606_v14  ;;  %v2288_v7 = vpop.f32.mrb[48].mxu0  ;;  %v2712_v10 = vpack.c.bf16 %v2616_v22, %v2608_v4  ;;  %v2514_v62 = vpop.f32.mrb[48].mxu1 }
 0x1fd   : > { %v4635_v24 = vadd.f32 %v2288_v7, %v6143_v48  ;;  %v2290_v40 = vpop.f32.mrb[49].mxu0  ;;  %v4667_v41 = vadd.f32 %v2514_v62, %v6146_v57  ;;  %v2516_v3 = vpop.f32.mrb[49].mxu1 }
 0x1fe   : > { %v4636_v46 = vadd.f32 %v2290_v40, %v6149_v59  ;;  %v2292_v8 = vpop.f32.mrb[50].mxu0  ;;  %3514 = vmatprep.mubr.bf16.mxu0 %v2710_v6  ;;  %v4668_v19 = vadd.f32 %v2516_v3, %v6152_v2  ;;  %v2518_v28 = vpop.f32.mrb[50].mxu1  ;;  %3611 = vmatprep.mubr.bf16.mxu1 %v2712_v10 }
 0x1ff   : > { %v4637_v31 = vadd.f32 %v2292_v8, %v6143_v48  ;;  %v2294_v11 = vpop.f32.mrb[51].mxu0  ;;  %3515 = vmatmul.mubr.bf16.gmra.mrb[108].mxu0 %v2709_v5  ;;  %v4669_v13 = vadd.f32 %v2518_v28, %v6146_v57  ;;  %v2520_v17 = vpop.f32.mrb[51].mxu1  ;;  %3612 = vmatmul.mubr.bf16.gmra.mrb[108].mxu1 %v2711_v38  ;;  %v2621_v47 = vmax.f32 %v4635_v24, 0.0  ;;  %v2623_v36 = vmax.f32 %v4667_v41, 0.0 }
 0x200   : > { %v4638_v16 = vadd.f32 %v2294_v11, %v6149_v59  ;;  %v4670_v63 = vadd.f32 %v2520_v17, %v6152_v2  ;;  %v2622_v18 = vmax.f32 %v4636_v46, 0.0  ;;  %v2624_v23 = vmax.f32 %v4668_v19, 0.0 }
 0x201   : > { %v2629_v53 = vmax.f32 %v4637_v31, 0.0  ;;  %v2631_v20 = vmax.f32 %v4669_v13, 0.0 }
 0x202   : > { %v2630_v39 = vmax.f32 %v4638_v16, 0.0  ;;  %v2632_v12 = vmax.f32 %v4670_v63, 0.0 }
 0x203   : > { %v2717_v27 = vpack.c.bf16 %v2629_v53, %v2621_v47  ;;  %v2719_v25 = vpack.c.bf16 %v2631_v20, %v2623_v36 }
 0x204   : > { %v2718_v29 = vpack.c.bf16 %v2630_v39, %v2622_v18  ;;  %v2298_v30 = vpop.f32.mrb[52].mxu0  ;;  %v2720_v32 = vpack.c.bf16 %v2632_v12, %v2624_v23  ;;  %v2524_v34 = vpop.f32.mrb[52].mxu1 }
 0x205   : > { %v4639_v33 = vadd.f32 %v2298_v30, %v6143_v48  ;;  %v2300_v58 = vpop.f32.mrb[53].mxu0  ;;  %v4671_v42 = vadd.f32 %v2524_v34, %v6146_v57  ;;  %v2526_v15 = vpop.f32.mrb[53].mxu1 }
 0x206   : > { %v4640_v54 = vadd.f32 %v2300_v58, %v6149_v59  ;;  %v2302_v49 = vpop.f32.mrb[54].mxu0  ;;  %3522 = vmatprep.mubr.bf16.mxu0 %v2718_v29  ;;  %v4672_v26 = vadd.f32 %v2526_v15, %v6152_v2  ;;  %v2528_v37 = vpop.f32.mrb[54].mxu1  ;;  %3619 = vmatprep.mubr.bf16.mxu1 %v2720_v32 }
 0x207   : > { %v4641_v35 = vadd.f32 %v2302_v49, %v6143_v48  ;;  %v2304_v61 = vpop.f32.mrb[55].mxu0  ;;  %3523 = vmatmul.mubr.bf16.gmra.mrb[112].mxu0 %v2717_v27  ;;  %v4673_v43 = vadd.f32 %v2528_v37, %v6146_v57  ;;  %v2530_v0 = vpop.f32.mrb[55].mxu1  ;;  %3620 = vmatmul.mubr.bf16.gmra.mrb[112].mxu1 %v2719_v25  ;;  %v2637_v45 = vmax.f32 %v4639_v33, 0.0  ;;  %v2639_v52 = vmax.f32 %v4671_v42, 0.0 }
 0x208   : > { %v4642_v44 = vadd.f32 %v2304_v61, %v6149_v59  ;;  %v4674_v51 = vadd.f32 %v2530_v0, %v6152_v2  ;;  %v2638_v55 = vmax.f32 %v4640_v54, 0.0  ;;  %v2640_v21 = vmax.f32 %v4672_v26, 0.0 }
 0x209   : > { %v2645_v50 = vmax.f32 %v4641_v35, 0.0  ;;  %v2647_v14 = vmax.f32 %v4673_v43, 0.0 }
 0x20a   : > { %v2646_v56 = vmax.f32 %v4642_v44, 0.0  ;;  %v2648_v1 = vmax.f32 %v4674_v51, 0.0 }
 0x20b   : > { %v2725_v60 = vpack.c.bf16 %v2645_v50, %v2637_v45  ;;  %v2727_v4 = vpack.c.bf16 %v2647_v14, %v2639_v52 }
 0x20c   : > { %v2726_v5 = vpack.c.bf16 %v2646_v56, %v2638_v55  ;;  %v2308_v22 = vpop.f32.mrb[56].mxu0  ;;  %v2728_v38 = vpack.c.bf16 %v2648_v1, %v2640_v21  ;;  %v2534_v7 = vpop.f32.mrb[56].mxu1  ;;  %v4886_v1 = vld [vmem:[%s6344_s5 + $0x18] sm:$0xff]  }
 0x20d   : > { %v4643_v6 = vadd.f32 %v2308_v22, %v6143_v48  ;;  %v2310_v10 = vpop.f32.mrb[57].mxu0  ;;  %v4675_v24 = vadd.f32 %v2534_v7, %v6146_v57  ;;  %v2536_v40 = vpop.f32.mrb[57].mxu1  ;;  %4513 = vmatprep.subr.bf16.mxu0 %v4886_v1  ;;  %4542 = vmatprep.subr.bf16.mxu1 %v4886_v1 }
 0x20e   : > { %v4644_v62 = vadd.f32 %v2310_v10, %v6149_v59  ;;  %v2312_v41 = vpop.f32.mrb[58].mxu0  ;;  %3530 = vmatprep.mubr.bf16.mxu0 %v2726_v5  ;;  %v4676_v46 = vadd.f32 %v2536_v40, %v6152_v2  ;;  %v2538_v8 = vpop.f32.mrb[58].mxu1  ;;  %3627 = vmatprep.mubr.bf16.mxu1 %v2728_v38 }
 0x20f   : > { %v4645_v3 = vadd.f32 %v2312_v41, %v6143_v48  ;;  %v2314_v9 = vpop.f32.mrb[59].mxu0  ;;  %3531 = vmatmul.mubr.bf16.gmra.mrb[116].mxu0 %v2725_v60  ;;  %v4677_v19 = vadd.f32 %v2538_v8, %v6146_v57  ;;  %v2540_v28 = vpop.f32.mrb[59].mxu1  ;;  %3628 = vmatmul.mubr.bf16.gmra.mrb[116].mxu1 %v2727_v4  ;;  %v2653_v11 = vmax.f32 %v4643_v6, 0.0  ;;  %v2655_v17 = vmax.f32 %v4675_v24, 0.0  ;;  %v4887_v41 = vld [vmem:[%s6344_s5 + $0x20] sm:$0xff]  }
 0x210   : > { %v4646_v31 = vadd.f32 %v2314_v9, %v6149_v59  ;;  %v4678_v16 = vadd.f32 %v2540_v28, %v6152_v2  ;;  %v2654_v47 = vmax.f32 %v4644_v62, 0.0  ;;  %v2656_v36 = vmax.f32 %v4676_v46, 0.0  ;;  %4514 = vmatpush3.bf16.msra.mxu0 %v4886_v1  ;;  %4550 = vmatpush3.bf16.msra.mxu1 %v4886_v1  ;;  %v4888_v28 = vld [vmem:[%s6344_s5 + $0x28] sm:$0xff]  }
 0x211   : > { %v2661_v13 = vmax.f32 %v4645_v3, 0.0  ;;  %v2663_v53 = vmax.f32 %v4677_v19, 0.0  ;;  %4515 = vmatprep.subr.bf16.mxu0 %v4887_v41  ;;  %4543 = vmatprep.subr.bf16.mxu1 %v4887_v41 }
 0x212   : > { %v2662_v63 = vmax.f32 %v4646_v31, 0.0  ;;  %v2664_v20 = vmax.f32 %v4678_v16, 0.0 }
 0x213   : > { %v2733_v18 = vpack.c.bf16 %v2661_v13, %v2653_v11  ;;  %v2735_v39 = vpack.c.bf16 %v2663_v53, %v2655_v17 }
 0x214   : > { %v2734_v23 = vpack.c.bf16 %v2662_v63, %v2654_v47  ;;  %v2318_v27 = vpop.f32.mrb[60].mxu0  ;;  %v2736_v12 = vpack.c.bf16 %v2664_v20, %v2656_v36  ;;  %v2544_v29 = vpop.f32.mrb[60].mxu1  ;;  %4516 = vmatpush3.bf16.msra.mxu0 %v4887_v41  ;;  %4551 = vmatpush3.bf16.msra.mxu1 %v4887_v41 }
 0x215   : > { %v4647_v25 = vadd.f32 %v2318_v27, %v6143_v48  ;;  %v2320_v30 = vpop.f32.mrb[61].mxu0  ;;  %v4679_v32 = vadd.f32 %v2544_v29, %v6146_v57  ;;  %v2546_v34 = vpop.f32.mrb[61].mxu1  ;;  %4517 = vmatprep.subr.bf16.mxu0 %v4888_v28  ;;  %4544 = vmatprep.subr.bf16.mxu1 %v4888_v28 }
 0x216   : > { %v4648_v33 = vadd.f32 %v2320_v30, %v6149_v59  ;;  %v2322_v58 = vpop.f32.mrb[62].mxu0  ;;  %3538 = vmatprep.mubr.bf16.mxu0 %v2734_v23  ;;  %v4680_v42 = vadd.f32 %v2546_v34, %v6152_v2  ;;  %v2548_v15 = vpop.f32.mrb[62].mxu1  ;;  %3635 = vmatprep.mubr.bf16.mxu1 %v2736_v12 }
 0x217   : > { %v4649_v54 = vadd.f32 %v2322_v58, %v6143_v48  ;;  %v2324_v49 = vpop.f32.mrb[63].mxu0  ;;  %3539 = vmatmul.mubr.bf16.gmra.mrb[120].mxu0 %v2733_v18  ;;  %v4681_v26 = vadd.f32 %v2548_v15, %v6146_v57  ;;  %v2550_v37 = vpop.f32.mrb[63].mxu1  ;;  %3636 = vmatmul.mubr.bf16.gmra.mrb[120].mxu1 %v2735_v39  ;;  %v2669_v61 = vmax.f32 %v4647_v25, 0.0  ;;  %v2671_v0 = vmax.f32 %v4679_v32, 0.0  ;;  %v4889_v39 = vld [vmem:[%s6344_s5 + $0x30] sm:$0xff]   ;;  %v4890_v32 = vld [vmem:[%s6344_s5 + $0x38] sm:$0xff]  }
 0x218   : > { %v4650_v35 = vadd.f32 %v2324_v49, %v6149_v59  ;;  %v4682_v44 = vadd.f32 %v2550_v37, %v6152_v2  ;;  %v2670_v45 = vmax.f32 %v4648_v33, 0.0  ;;  %v2672_v52 = vmax.f32 %v4680_v42, 0.0  ;;  %v6230_v2 = vld [vmem:[%s6343_s4] ss:$0 sm:$0xff]  ;;  %4518 = vmatpush3.bf16.msra.mxu0 %v4888_v28  ;;  %4552 = vmatpush3.bf16.msra.mxu1 %v4888_v28 }
 0x219   : > { %v2677_v43 = vmax.f32 %v4649_v54, 0.0  ;;  %v2679_v50 = vmax.f32 %v4681_v26, 0.0  ;;  %4519 = vmatprep.subr.bf16.mxu0 %v4889_v39  ;;  %4545 = vmatprep.subr.bf16.mxu1 %v4889_v39 }
 0x21a   : > { %v2678_v51 = vmax.f32 %v4650_v35, 0.0  ;;  %v2680_v55 = vmax.f32 %v4682_v44, 0.0 }
 0x21b   : > { %v2741_v48 = vpack.c.bf16 %v2677_v43, %v2669_v61  ;;  %v2743_v14 = vpack.c.bf16 %v2679_v50, %v2671_v0 }
 0x21c   : > { %v2742_v56 = vpack.c.bf16 %v2678_v51, %v2670_v45  ;;  %v2744_v21 = vpack.c.bf16 %v2680_v55, %v2672_v52  ;;  %4520 = vmatpush3.bf16.msra.mxu0 %v4889_v39  ;;  %4553 = vmatpush3.bf16.msra.mxu1 %v4889_v39 }
 0x21d   : > { %4521 = vmatprep.subr.bf16.mxu0 %v4890_v32  ;;  %4546 = vmatprep.subr.bf16.mxu1 %v4890_v32 }
 0x21e   : > { %3546 = vmatprep.mubr.bf16.mxu0 %v2742_v56  ;;  %3643 = vmatprep.mubr.bf16.mxu1 %v2744_v21 }
 0x21f   : > { %3547 = vmatmul.mubr.bf16.gmra.mrb[124].mxu0 %v2741_v48  ;;  %3644 = vmatmul.mubr.bf16.gmra.mrb[124].mxu1 %v2743_v14 }
 0x220   : > { %4522 = vmatpush3.bf16.msra.mxu0 %v4890_v32  ;;  %4554 = vmatpush3.bf16.msra.mxu1 %v4890_v32 }
 0x23a   : > { %v4251_v57 = vpop.f32.mrb[64].mxu0  ;;  %v4315_v59 = vpop.f32.mrb[64].mxu1 }
 0x23b   : > { %v4252_v60 = vpop.f32.mrb[65].mxu0  ;;  %v4316_v5 = vpop.f32.mrb[65].mxu1 }
 0x23c   : > { %v4253_v4 = vadd.f32 %v4252_v60, %v4251_v57  ;;  %v4254_v22 = vpop.f32.mrb[66].mxu0  ;;  %v4317_v38 = vadd.f32 %v4316_v5, %v4315_v59  ;;  %v4318_v6 = vpop.f32.mrb[66].mxu1 }
 0x23d   : > { %v4255_v7 = vpop.f32.mrb[67].mxu0  ;;  %v4319_v62 = vpop.f32.mrb[67].mxu1 }
 0x23e   : > { %v3299_v10 = vadd.f32 %v4253_v4, %v6230_v2  ;;  %v4256_v24 = vadd.f32 %v4255_v7, %v4254_v22  ;;  %v4320_v40 = vadd.f32 %v4319_v62, %v4318_v6 }
 0x240   : > { %v6239_v46 = vadd.f32 %v4317_v38, %v3299_v10  ;;  %v3302_v3 = vadd.f32 %v4256_v24, %v6230_v2 }
 0x242   : > { %v6242_v8 = vadd.f32 %v4320_v40, %v3302_v3  ;;  %v4257_v9 = vpop.f32.mrb[68].mxu0  ;;  %v4321_v19 = vpop.f32.mrb[68].mxu1 }
 0x243   : > { %v4258_v31 = vpop.f32.mrb[69].mxu0  ;;  %v4322_v13 = vpop.f32.mrb[69].mxu1 }
 0x244   : > { %v4259_v11 = vadd.f32 %v4258_v31, %v4257_v9  ;;  %v4260_v16 = vpop.f32.mrb[70].mxu0  ;;  %v4323_v17 = vadd.f32 %v4322_v13, %v4321_v19  ;;  %v4324_v47 = vpop.f32.mrb[70].mxu1 }
 0x245   : > { %v4261_v53 = vpop.f32.mrb[71].mxu0  ;;  %v4325_v18 = vpop.f32.mrb[71].mxu1 }
 0x246   : > { %v3307_v63 = vadd.f32 %v4259_v11, %v6230_v2  ;;  %v4262_v36 = vadd.f32 %v4261_v53, %v4260_v16  ;;  %v4326_v20 = vadd.f32 %v4325_v18, %v4324_v47 }
 0x248   : > { %v6251_v23 = vadd.f32 %v4323_v17, %v3307_v63  ;;  %v3310_v27 = vadd.f32 %v4262_v36, %v6230_v2 }
 0x24a   : > { %v6254_v12 = vadd.f32 %v4326_v20, %v3310_v27  ;;  %v4263_v25 = vpop.f32.mrb[72].mxu0  ;;  %v4327_v29 = vpop.f32.mrb[72].mxu1 }
 0x24b   : > { %v4264_v30 = vpop.f32.mrb[73].mxu0  ;;  %v4328_v34 = vpop.f32.mrb[73].mxu1 }
 0x24c   : > { %v4265_v33 = vadd.f32 %v4264_v30, %v4263_v25  ;;  %v4266_v58 = vpop.f32.mrb[74].mxu0  ;;  %v4329_v42 = vadd.f32 %v4328_v34, %v4327_v29  ;;  %v4330_v54 = vpop.f32.mrb[74].mxu1 }
 0x24d   : > { %v4267_v15 = vpop.f32.mrb[75].mxu0  ;;  %v4331_v35 = vpop.f32.mrb[75].mxu1 }
 0x24e   : > { %v3315_v49 = vadd.f32 %v4265_v33, %v6230_v2  ;;  %v4268_v26 = vadd.f32 %v4267_v15, %v4266_v58  ;;  %v4332_v37 = vadd.f32 %v4331_v35, %v4330_v54 }
 0x250   : > { %v6260_v61 = vadd.f32 %v4329_v42, %v3315_v49  ;;  %v3318_v43 = vadd.f32 %v4268_v26, %v6230_v2 }
 0x252   : > { %v6263_v44 = vadd.f32 %v4332_v37, %v3318_v43  ;;  %v4269_v0 = vpop.f32.mrb[76].mxu0  ;;  %v4333_v45 = vpop.f32.mrb[76].mxu1 }
 0x253   : > { %v4270_v50 = vpop.f32.mrb[77].mxu0  ;;  %v4334_v52 = vpop.f32.mrb[77].mxu1 }
 0x254   : > { %v4271_v51 = vadd.f32 %v4270_v50, %v4269_v0  ;;  %v4272_v48 = vpop.f32.mrb[78].mxu0  ;;  %v4335_v55 = vadd.f32 %v4334_v52, %v4333_v45  ;;  %v4336_v14 = vpop.f32.mrb[78].mxu1 }
 0x255   : > { %v4273_v56 = vpop.f32.mrb[79].mxu0  ;;  %v4337_v59 = vpop.f32.mrb[79].mxu1 }
 0x256   : > { %v3323_v21 = vadd.f32 %v4271_v51, %v6230_v2  ;;  %v4274_v57 = vadd.f32 %v4273_v56, %v4272_v48  ;;  %v4338_v60 = vadd.f32 %v4337_v59, %v4336_v14 }
 0x258   : > { %v6266_v1 = vadd.f32 %v4335_v55, %v3323_v21  ;;  %v3326_v4 = vadd.f32 %v4274_v57, %v6230_v2 }
 0x25a   : > { %v6269_v5 = vadd.f32 %v4338_v60, %v3326_v4  ;;  %v4275_v22 = vpop.f32.mrb[80].mxu0  ;;  %v4339_v38 = vpop.f32.mrb[80].mxu1 }
 0x25b   : > { %v4276_v6 = vpop.f32.mrb[81].mxu0  ;;  %v4340_v10 = vpop.f32.mrb[81].mxu1 }
 0x25c   : > { %v4277_v7 = vadd.f32 %v4276_v6, %v4275_v22  ;;  %v4278_v24 = vpop.f32.mrb[82].mxu0  ;;  %v4341_v62 = vadd.f32 %v4340_v10, %v4339_v38  ;;  %v4342_v40 = vpop.f32.mrb[82].mxu1 }
 0x25d   : > { %v4279_v41 = vpop.f32.mrb[83].mxu0  ;;  %v4343_v19 = vpop.f32.mrb[83].mxu1 }
 0x25e   : > { %v3331_v3 = vadd.f32 %v4277_v7, %v6230_v2  ;;  %v4280_v9 = vadd.f32 %v4279_v41, %v4278_v24  ;;  %v4344_v31 = vadd.f32 %v4343_v19, %v4342_v40 }
 0x260   : > { %v6272_v28 = vadd.f32 %v4341_v62, %v3331_v3  ;;  %v3334_v11 = vadd.f32 %v4280_v9, %v6230_v2 }
 0x262   : > { %v6275_v13 = vadd.f32 %v4344_v31, %v3334_v11  ;;  %v4281_v16 = vpop.f32.mrb[84].mxu0  ;;  %v4345_v17 = vpop.f32.mrb[84].mxu1 }
 0x263   : > { %v4282_v47 = vpop.f32.mrb[85].mxu0  ;;  %v4346_v63 = vpop.f32.mrb[85].mxu1 }
 0x264   : > { %v4283_v53 = vadd.f32 %v4282_v47, %v4281_v16  ;;  %v4284_v36 = vpop.f32.mrb[86].mxu0  ;;  %v4347_v18 = vadd.f32 %v4346_v63, %v4345_v17  ;;  %v4348_v20 = vpop.f32.mrb[86].mxu1 }
 0x265   : > { %v4285_v39 = vpop.f32.mrb[87].mxu0  ;;  %v4349_v29 = vpop.f32.mrb[87].mxu1 }
 0x266   : > { %v3339_v27 = vadd.f32 %v4283_v53, %v6230_v2  ;;  %v4286_v25 = vadd.f32 %v4285_v39, %v4284_v36  ;;  %v4350_v30 = vadd.f32 %v4349_v29, %v4348_v20 }
 0x268   : > { %v6278_v32 = vadd.f32 %v4347_v18, %v3339_v27  ;;  %v3342_v33 = vadd.f32 %v4286_v25, %v6230_v2 }
 0x26a   : > { %v6281_v34 = vadd.f32 %v4350_v30, %v3342_v33  ;;  %v4287_v58 = vpop.f32.mrb[88].mxu0  ;;  %v4351_v42 = vpop.f32.mrb[88].mxu1 }
 0x26b   : > { %v4288_v54 = vpop.f32.mrb[89].mxu0  ;;  %v4352_v49 = vpop.f32.mrb[89].mxu1 }
 0x26c   : > { %v4289_v15 = vadd.f32 %v4288_v54, %v4287_v58  ;;  %v4290_v26 = vpop.f32.mrb[90].mxu0  ;;  %v4353_v35 = vadd.f32 %v4352_v49, %v4351_v42  ;;  %v4354_v37 = vpop.f32.mrb[90].mxu1 }
 0x26d   : > { %v4291_v43 = vpop.f32.mrb[91].mxu0  ;;  %v4355_v50 = vpop.f32.mrb[91].mxu1 }
 0x26e   : > { %v3347_v0 = vadd.f32 %v4289_v15, %v6230_v2  ;;  %v4292_v45 = vadd.f32 %v4291_v43, %v4290_v26  ;;  %v4356_v51 = vadd.f32 %v4355_v50, %v4354_v37 }
 0x270   : > { %v6284_v52 = vadd.f32 %v4353_v35, %v3347_v0  ;;  %v3350_v48 = vadd.f32 %v4292_v45, %v6230_v2 }
 0x272   : > { %v6287_v55 = vadd.f32 %v4356_v51, %v3350_v48  ;;  %v4293_v14 = vpop.f32.mrb[92].mxu0  ;;  %v4357_v56 = vpop.f32.mrb[92].mxu1 }
 0x273   : > { %v4294_v21 = vpop.f32.mrb[93].mxu0  ;;  %v4358_v59 = vpop.f32.mrb[93].mxu1 }
 0x274   : > { %v4295_v57 = vadd.f32 %v4294_v21, %v4293_v14  ;;  %v4296_v60 = vpop.f32.mrb[94].mxu0  ;;  %v4359_v4 = vadd.f32 %v4358_v59, %v4357_v56  ;;  %v4360_v22 = vpop.f32.mrb[94].mxu1 }
 0x275   : > { %v4297_v38 = vpop.f32.mrb[95].mxu0  ;;  %v4361_v10 = vpop.f32.mrb[95].mxu1 }
 0x276   : > { %v3355_v6 = vadd.f32 %v4295_v57, %v6230_v2  ;;  %v4298_v7 = vadd.f32 %v4297_v38, %v4296_v60  ;;  %v4362_v24 = vadd.f32 %v4361_v10, %v4360_v22 }
 0x278   : > { %v6290_v62 = vadd.f32 %v4359_v4, %v3355_v6  ;;  %v3358_v40 = vadd.f32 %v4298_v7, %v6230_v2 }
 0x27a   : > { %v6293_v41 = vadd.f32 %v4362_v24, %v3358_v40 }
 0x2ba   : > { %v4379_v3 = vpop.f32.mrb[96].mxu0  ;;  %v4443_v9 = vpop.f32.mrb[96].mxu1 }
 0x2bb   : > { %v4380_v19 = vpop.f32.mrb[97].mxu0  ;;  %v4444_v11 = vpop.f32.mrb[97].mxu1 }
 0x2bc   : > { %v4381_v31 = vadd.f32 %v4380_v19, %v4379_v3  ;;  %v4382_v16 = vpop.f32.mrb[98].mxu0  ;;  %v4445_v17 = vadd.f32 %v4444_v11, %v4443_v9  ;;  %v4446_v47 = vpop.f32.mrb[98].mxu1 }
 0x2bd   : > { %v4383_v53 = vpop.f32.mrb[99].mxu0  ;;  %v4447_v18 = vpop.f32.mrb[99].mxu1 }
 0x2be   : > { %v3493_v63 = vadd.f32 %v4381_v31, %v6239_v46  ;;  %v4384_v36 = vadd.f32 %v4383_v53, %v4382_v16  ;;  %v4448_v20 = vadd.f32 %v4447_v18, %v4446_v47 }
 0x2c0   : > { %v3590_v39 = vadd.f32 %v4445_v17, %v3493_v63  ;;  %v3496_v27 = vadd.f32 %v4384_v36, %v6242_v8 }
 0x2c2   : > { %v3593_v2 = vadd.f32 %v4448_v20, %v3496_v27  ;;  %v4385_v25 = vpop.f32.mrb[100].mxu0  ;;  %v4449_v29 = vpop.f32.mrb[100].mxu1  ;;  %v3652_v33 = vmax.f32 %v3590_v39, 0.0 }
 0x2c3   : > { %v4386_v30 = vpop.f32.mrb[101].mxu0  ;;  %v4450_v54 = vpop.f32.mrb[101].mxu1 }
 0x2c4   : > { %v3653_v58 = vmax.f32 %v3593_v2, 0.0  ;;  %v4387_v42 = vadd.f32 %v4386_v30, %v4385_v25  ;;  %v4388_v15 = vpop.f32.mrb[102].mxu0  ;;  %v4451_v49 = vadd.f32 %v4450_v54, %v4449_v29  ;;  %v4452_v26 = vpop.f32.mrb[102].mxu1 }
 0x2c5   : > { %v4389_v35 = vpop.f32.mrb[103].mxu0  ;;  %v4453_v43 = vpop.f32.mrb[103].mxu1 }
 0x2c6   : > { %v3501_v46 = vadd.f32 %v4387_v42, %v6251_v23  ;;  %v4390_v37 = vadd.f32 %v4389_v35, %v4388_v15  ;;  %v3668_v0 = vpack.c.bf16 %v3653_v58, %v3652_v33  ;;  %v4454_v45 = vadd.f32 %v4453_v43, %v4452_v26 }
 0x2c8   : > { %v3598_v50 = vadd.f32 %v4451_v49, %v3501_v46  ;;  %v3504_v8 = vadd.f32 %v4390_v37, %v6254_v12  ;;  %4523 = vmatprep.mubr.bf16.mxu0 %v3668_v0 }
 0x2ca   : > { %v3601_v51 = vadd.f32 %v4454_v45, %v3504_v8  ;;  %v4391_v48 = vpop.f32.mrb[104].mxu0  ;;  %v4455_v14 = vpop.f32.mrb[104].mxu1  ;;  %v3654_v21 = vmax.f32 %v3598_v50, 0.0 }
 0x2cb   : > { %v4392_v56 = vpop.f32.mrb[105].mxu0  ;;  %v4456_v60 = vpop.f32.mrb[105].mxu1 }
 0x2cc   : > { %v3655_v57 = vmax.f32 %v3601_v51, 0.0  ;;  %v4393_v59 = vadd.f32 %v4392_v56, %v4391_v48  ;;  %v4394_v4 = vpop.f32.mrb[106].mxu0  ;;  %v4457_v22 = vadd.f32 %v4456_v60, %v4455_v14  ;;  %v4458_v38 = vpop.f32.mrb[106].mxu1 }
 0x2cd   : > { %v4395_v23 = vpop.f32.mrb[107].mxu0  ;;  %v4459_v24 = vpop.f32.mrb[107].mxu1 }
 0x2ce   : > { %v3669_v6 = vpack.c.bf16 %v3655_v57, %v3654_v21  ;;  %v3509_v7 = vadd.f32 %v4393_v59, %v6260_v61  ;;  %v4396_v10 = vadd.f32 %v4395_v23, %v4394_v4  ;;  %v4460_v40 = vadd.f32 %v4459_v24, %v4458_v38 }
 0x2d0   : > { %v3606_v12 = vadd.f32 %v4457_v22, %v3509_v7  ;;  %v3512_v3 = vadd.f32 %v4396_v10, %v6263_v44  ;;  %4524 = vmatmul.mubr.bf16.vlgmr.msra.gmra.mrb[128].mxu0 %v3669_v6 }
 0x2d2   : > { %v3609_v9 = vadd.f32 %v4460_v40, %v3512_v3  ;;  %v4397_v19 = vpop.f32.mrb[108].mxu0  ;;  %v4461_v31 = vpop.f32.mrb[108].mxu1  ;;  %v3656_v16 = vmax.f32 %v3606_v12, 0.0 }
 0x2d3   : > { %v4398_v11 = vpop.f32.mrb[109].mxu0  ;;  %v4462_v53 = vpop.f32.mrb[109].mxu1 }
 0x2d4   : > { %v3657_v17 = vmax.f32 %v3609_v9, 0.0  ;;  %v4399_v47 = vadd.f32 %v4398_v11, %v4397_v19  ;;  %v4400_v63 = vpop.f32.mrb[110].mxu0  ;;  %v4463_v36 = vadd.f32 %v4462_v53, %v4461_v31  ;;  %v4464_v18 = vpop.f32.mrb[110].mxu1 }
 0x2d5   : > { %v4401_v20 = vpop.f32.mrb[111].mxu0  ;;  %v4465_v27 = vpop.f32.mrb[111].mxu1 }
 0x2d6   : > { %v3517_v61 = vadd.f32 %v4399_v47, %v6266_v1  ;;  %v4402_v39 = vadd.f32 %v4401_v20, %v4400_v63  ;;  %v3670_v2 = vpack.c.bf16 %v3657_v17, %v3656_v16  ;;  %v4466_v25 = vadd.f32 %v4465_v27, %v4464_v18 }
 0x2d8   : > { %v3614_v44 = vadd.f32 %v4463_v36, %v3517_v61  ;;  %v3520_v29 = vadd.f32 %v4402_v39, %v6269_v5  ;;  %4527 = vmatprep.mubr.bf16.mxu0 %v3670_v2 }
 0x2da   : > { %v3617_v30 = vadd.f32 %v4466_v25, %v3520_v29  ;;  %v4403_v33 = vpop.f32.mrb[112].mxu0  ;;  %v4467_v58 = vpop.f32.mrb[112].mxu1  ;;  %v3658_v54 = vmax.f32 %v3614_v44, 0.0 }
 0x2db   : > { %v4404_v42 = vpop.f32.mrb[113].mxu0  ;;  %v4468_v26 = vpop.f32.mrb[113].mxu1 }
 0x2dc   : > { %v3659_v15 = vmax.f32 %v3617_v30, 0.0  ;;  %v4405_v49 = vadd.f32 %v4404_v42, %v4403_v33  ;;  %v4406_v35 = vpop.f32.mrb[114].mxu0  ;;  %v4469_v46 = vadd.f32 %v4468_v26, %v4467_v58  ;;  %v4470_v37 = vpop.f32.mrb[114].mxu1 }
 0x2dd   : > { %v4407_v1 = vpop.f32.mrb[115].mxu0  ;;  %v4471_v45 = vpop.f32.mrb[115].mxu1 }
 0x2de   : > { %v3525_v43 = vadd.f32 %v4405_v49, %v6272_v28  ;;  %v4408_v0 = vadd.f32 %v4407_v1, %v4406_v35  ;;  %v3671_v50 = vpack.c.bf16 %v3659_v15, %v3658_v54  ;;  %v4472_v8 = vadd.f32 %v4471_v45, %v4470_v37 }
 0x2e0   : > { %v3622_v5 = vadd.f32 %v4469_v46, %v3525_v43  ;;  %v3528_v51 = vadd.f32 %v4408_v0, %v6275_v13  ;;  %4528 = vmatmul.mubr.bf16.gmra.mrb[132].mxu0 %v3671_v50 }
 0x2e2   : > { %v3625_v48 = vadd.f32 %v4472_v8, %v3528_v51  ;;  %v4409_v14 = vpop.f32.mrb[116].mxu0  ;;  %v4473_v56 = vpop.f32.mrb[116].mxu1  ;;  %v3660_v57 = vmax.f32 %v3622_v5, 0.0  ;;  %v4223_v51 = vld [vmem:[%s6345_s6] ss:$0 sm:$0xff] }
 0x2e3   : > { %v4410_v21 = vpop.f32.mrb[117].mxu0  ;;  %v4474_v4 = vpop.f32.mrb[117].mxu1 }
 0x2e4   : > { %v3661_v59 = vmax.f32 %v3625_v48, 0.0  ;;  %v4411_v60 = vadd.f32 %v4410_v21, %v4409_v14  ;;  %v4412_v22 = vpop.f32.mrb[118].mxu0  ;;  %v4475_v38 = vadd.f32 %v4474_v4, %v4473_v56  ;;  %v4476_v23 = vpop.f32.mrb[118].mxu1 }
 0x2e5   : > { %v4413_v28 = vpop.f32.mrb[119].mxu0  ;;  %v4477_v10 = vpop.f32.mrb[119].mxu1 }
 0x2e6   : > { %v3533_v6 = vadd.f32 %v4411_v60, %v6278_v32  ;;  %v4414_v7 = vadd.f32 %v4413_v28, %v4412_v22  ;;  %v3672_v24 = vpack.c.bf16 %v3661_v59, %v3660_v57  ;;  %v4478_v40 = vadd.f32 %v4477_v10, %v4476_v23 }
 0x2e8   : > { %v3630_v13 = vadd.f32 %v4475_v38, %v3533_v6  ;;  %v3536_v12 = vadd.f32 %v4414_v7, %v6281_v34  ;;  %4531 = vmatprep.mubr.bf16.mxu1 %v3672_v24 }
 0x2ea   : > { %v3633_v3 = vadd.f32 %v4478_v40, %v3536_v12  ;;  %v4415_v9 = vpop.f32.mrb[120].mxu0  ;;  %v4479_v19 = vpop.f32.mrb[120].mxu1  ;;  %v3662_v11 = vmax.f32 %v3630_v13, 0.0 }
 0x2eb   : > { %v4416_v31 = vpop.f32.mrb[121].mxu0  ;;  %v4480_v47 = vpop.f32.mrb[121].mxu1 }
 0x2ec   : > { %v3663_v16 = vmax.f32 %v3633_v3, 0.0  ;;  %v4417_v17 = vadd.f32 %v4416_v31, %v4415_v9  ;;  %v4418_v53 = vpop.f32.mrb[122].mxu0  ;;  %v4481_v63 = vadd.f32 %v4480_v47, %v4479_v19  ;;  %v4482_v36 = vpop.f32.mrb[122].mxu1 }
 0x2ed   : > { %v4419_v32 = vpop.f32.mrb[123].mxu0  ;;  %v4483_v39 = vpop.f32.mrb[123].mxu1 }
 0x2ee   : > { %v3673_v18 = vpack.c.bf16 %v3663_v16, %v3662_v11  ;;  %v3541_v20 = vadd.f32 %v4417_v17, %v6284_v52  ;;  %v4420_v61 = vadd.f32 %v4419_v32, %v4418_v53  ;;  %v4484_v27 = vadd.f32 %v4483_v39, %v4482_v36 }
 0x2f0   : > { %v3638_v34 = vadd.f32 %v4481_v63, %v3541_v20  ;;  %v3544_v2 = vadd.f32 %v4420_v61, %v6287_v55  ;;  %4532 = vmatmul.mubr.bf16.vlgmr.msra.gmra.mrb[128].mxu1 %v3673_v18 }
 0x2f2   : > { %v3641_v25 = vadd.f32 %v4484_v27, %v3544_v2  ;;  %v4421_v44 = vpop.f32.mrb[124].mxu0  ;;  %v4485_v29 = vpop.f32.mrb[124].mxu1  ;;  %v3664_v33 = vmax.f32 %v3638_v34, 0.0 }
 0x2f3   : > { %v4422_v30 = vpop.f32.mrb[125].mxu0  ;;  %v4486_v54 = vpop.f32.mrb[125].mxu1 }
 0x2f4   : > { %v3665_v58 = vmax.f32 %v3641_v25, 0.0  ;;  %v4423_v42 = vadd.f32 %v4422_v30, %v4421_v44  ;;  %v4424_v15 = vpop.f32.mrb[126].mxu0  ;;  %v4487_v49 = vadd.f32 %v4486_v54, %v4485_v29  ;;  %v4488_v26 = vpop.f32.mrb[126].mxu1 }
 0x2f5   : > { %v4425_v52 = vpop.f32.mrb[127].mxu0  ;;  %v4489_v37 = vpop.f32.mrb[127].mxu1 }
 0x2f6   : > { %v3549_v35 = vadd.f32 %v4423_v42, %v6290_v62  ;;  %v4426_v46 = vadd.f32 %v4425_v52, %v4424_v15  ;;  %v3674_v1 = vpack.c.bf16 %v3665_v58, %v3664_v33  ;;  %v4490_v55 = vadd.f32 %v4489_v37, %v4488_v26 }
 0x2f8   : > { %v3646_v43 = vadd.f32 %v4487_v49, %v3549_v35  ;;  %v3552_v0 = vadd.f32 %v4426_v46, %v6293_v41  ;;  %4535 = vmatprep.mubr.bf16.mxu1 %v3674_v1 }
 0x2fa   : > { %v3649_v45 = vadd.f32 %v4490_v55, %v3552_v0  ;;  %v3666_v50 = vmax.f32 %v3646_v43, 0.0 }
 0x2fc   : > { %v3667_v8 = vmax.f32 %v3649_v45, 0.0 }
 0x2fe   : > { %v3675_v5 = vpack.c.bf16 %v3667_v8, %v3666_v50 }
 0x300   : > { %4536 = vmatmul.mubr.bf16.gmra.mrb[132].mxu1 %v3675_v5 }
 0x3a3   : > { %v4525_v62 = vpop.f32.mrb[128].mxu0 }
 0x3a4   : > { %v3790_v41 = vadd.f32 %v4525_v62, %v4223_v51  ;;  %v3781_v48 = vpop.f32.mrb[129].mxu0 }
 0x3a5   : > { %v3782_v14 = vadd.f32 %v4223_v51, %v3781_v48  ;;  %v4526_v56 = vpop.f32.mrb[130].mxu0 }
 0x3a6   : > { %3846 = vst [vmem:[%s6318_s30 + $0x10] sm:$0xff] %v3790_v41  ;;  %v3793_v21 = vadd.f32 %v4526_v56, %v4223_v51  ;;  %v3784_v57 = vpop.f32.mrb[131].mxu0 }
 0x3a7   : > { %3844 = vst [vmem:[%s6318_s30] sm:$0xff] %v3782_v14  ;;  %v3785_v59 = vadd.f32 %v4223_v51, %v3784_v57 }
 0x3a8   : > { %3847 = vst [vmem:[%s6318_s30 + $0x18] sm:$0xff] %v3793_v21 }
 0x3a9   : > { %3845 = vst [vmem:[%s6318_s30 + $0x8] sm:$0xff] %v3785_v59 }
 0x3b3   : > { %v4529_v60 = vpop.f32.mrb[132].mxu0 }
 0x3b4   : > { %v3806_v4 = vadd.f32 %v4529_v60, %v4223_v51  ;;  %v3797_v22 = vpop.f32.mrb[133].mxu0 }
 0x3b5   : > { %v3798_v38 = vadd.f32 %v4223_v51, %v3797_v22  ;;  %v4530_v23 = vpop.f32.mrb[134].mxu0 }
 0x3b6   : > { %3850 = vst [vmem:[%s6318_s30 + $0x30] sm:$0xff] %v3806_v4  ;;  %v3809_v28 = vadd.f32 %v4530_v23, %v4223_v51  ;;  %v3800_v6 = vpop.f32.mrb[135].mxu0 }
 0x3b7   : > { %3848 = vst [vmem:[%s6318_s30 + $0x20] sm:$0xff] %v3798_v38  ;;  %v3801_v7 = vadd.f32 %v4223_v51, %v3800_v6 }
 0x3b8   : > { %3851 = vst [vmem:[%s6318_s30 + $0x38] sm:$0xff] %v3809_v28 }
 0x3b9   : > { %3849 = vst [vmem:[%s6318_s30 + $0x28] sm:$0xff] %v3801_v7 }
 0x3c3   : > { %v4533_v10 = vpop.f32.mrb[128].mxu1 }
 0x3c4   : > { %v3822_v24 = vadd.f32 %v4533_v10, %v4223_v51  ;;  %v3813_v40 = vpop.f32.mrb[129].mxu1 }
 0x3c5   : > { %v3814_v13 = vadd.f32 %v4223_v51, %v3813_v40  ;;  %v4534_v12 = vpop.f32.mrb[130].mxu1 }
 0x3c6   : > { %3854 = vst [vmem:[%s6318_s30 + $0x50] sm:$0xff] %v3822_v24  ;;  %v3825_v3 = vadd.f32 %v4534_v12, %v4223_v51  ;;  %v3816_v9 = vpop.f32.mrb[131].mxu1 }
 0x3c7   : > { %3852 = vst [vmem:[%s6318_s30 + $0x40] sm:$0xff] %v3814_v13  ;;  %v3817_v19 = vadd.f32 %v4223_v51, %v3816_v9 }
 0x3c8   : > { %3855 = vst [vmem:[%s6318_s30 + $0x58] sm:$0xff] %v3825_v3 }
 0x3c9   : > { %3853 = vst [vmem:[%s6318_s30 + $0x48] sm:$0xff] %v3817_v19 }
 0x3d3   : > { %v4537_v31 = vpop.f32.mrb[132].mxu1 }
 0x3d4   : > { %v3838_v11 = vadd.f32 %v4537_v31, %v4223_v51  ;;  %v3829_v16 = vpop.f32.mrb[133].mxu1 }
 0x3d5   : > { %v3830_v17 = vadd.f32 %v4223_v51, %v3829_v16  ;;  %v4538_v47 = vpop.f32.mrb[134].mxu1 }
 0x3d6   : > { %3858 = vst [vmem:[%s6318_s30 + $0x70] sm:$0xff] %v3838_v11  ;;  %v3841_v53 = vadd.f32 %v4538_v47, %v4223_v51  ;;  %v3832_v63 = vpop.f32.mrb[135].mxu1 }
 0x3d7   : > { %3856 = vst [vmem:[%s6318_s30 + $0x60] sm:$0xff] %v3830_v17  ;;  %v3833_v36 = vadd.f32 %v4223_v51, %v3832_v63 }
 0x3d8   : > { %3859 = vst [vmem:[%s6318_s30 + $0x78] sm:$0xff] %v3841_v53 }
 0x3d9   : > { %3857 = vst [vmem:[%s6318_s30 + $0x68] sm:$0xff] %v3833_v36 }
 0x3da PF: > { %s17_s24 = sadd.s32 1, %s4897_s24  }
 0x3db   : > { %p14_p4 = scmp.ge.s32.totalorder %s17_s24, 4  }
 0x3dd   :  { %16 = sbr.rel (!%p14_p4) target bundleno = 1 (0x1), region = 78 }

</bundles_post_ra>
